<compile_context>
chip_gen: v6e
topology: v6e:2x2x1
jax: 0.10.0
libtpu: 0.0.40
codegen_flags: <defaults>
</compile_context>

<pallas_src>
import jax
import jax.numpy as jnp
import numpy as np
from jax.experimental import pallas as pl
from jax.experimental.pallas import tpu as pltpu

# ----------------------------------------------------------------------------
# problem sizes (the argparse-driven values in the original script)
# ----------------------------------------------------------------------------
LATENT_DIM = 32      # opt.latent_dim
TOTAL_BITS = 16      # sum(input_def)
OUT_DIM = 2 * TOTAL_BITS
BATCH = 8

BN_EPS = 0.8         # nn.BatchNorm1d(out_feat, 0.8) -> eps = 0.8
LRELU_SLOPE = 0.2

# Packed layout of the small per-feature vectors.  Every offset is a multiple
# of 128 lanes, so static slices of the slab ref are aligned and free.
VEC_LAYOUT = (
    ("b1", 128),
    ("b2", 256), ("g2", 256), ("be2", 256),
    ("b3", 512), ("g3", 512), ("be3", 512),
    ("b4", 1024), ("g4", 1024), ("be4", 1024),
    ("b5", OUT_DIM),
)
VEC_OFFSETS = {}
_off = 0
for _name, _n in VEC_LAYOUT:
    VEC_OFFSETS[_name] = (_off, _n)
    _off += _n
VEC_TOTAL = _off  # 5536


# ----------------------------------------------------------------------------
# kernel
# ----------------------------------------------------------------------------
def generator_kernel(z_ref, w1_ref, w2_ref, w3_ref, w4_hbm_ref, w5_ref, vec_ref,
                     out_ref, w4_vmem, w4_sem):
    # Kick off the dominant (~1 MiB) w4 transfer immediately so it lands while
    # layers 1-3 compute (manual overlap; everything else is auto-DMA'd).
    w4_copy = pltpu.make_async_copy(w4_hbm_ref, w4_vmem, w4_sem)
    w4_copy.start()

    def seg(name):
        # Static, lane-aligned slice of the packed bias/gamma/beta slab.
        off, n = VEC_OFFSETS[name]
        return vec_ref[:, off:off + n]

    def linear(x, w, b):
        # bf16 x bf16 on the MXU with f32 accumulation; bias add in f32.
        return jnp.dot(x.astype(jnp.bfloat16), w,
                       preferred_element_type=jnp.float32) + b

    def leaky(x):
        # LeakyReLU(0.2): single VALU max instead of compare+select.
        return jnp.maximum(x, LRELU_SLOPE * x)

    def batchnorm(x, g, be):
        # training-mode BatchNorm1d: biased batch statistics, eps = 0.8.
        # Single pass: var = E[x^2] - E[x]^2 (safe here, eps is large).
        mu = jnp.mean(x, axis=0, keepdims=True)
        var = jnp.mean(x * x, axis=0, keepdims=True) - mu * mu
        return (x - mu) * jax.lax.rsqrt(var + BN_EPS) * g + be

    h = leaky(linear(z_ref[...], w1_ref[...], seg("b1")))                         # (B, 128)
    h = leaky(batchnorm(linear(h, w2_ref[...], seg("b2")), seg("g2"), seg("be2")))  # (B, 256)
    h = leaky(batchnorm(linear(h, w3_ref[...], seg("b3")), seg("g3"), seg("be3")))  # (B, 512)
    w4_copy.wait()   # w4 has been streaming in behind layers 1-3
    h = leaky(batchnorm(linear(h, w4_vmem[...], seg("b4")), seg("g4"), seg("be4")))  # (B, 1024)
    y = jnp.tanh(linear(h, w5_ref[...], seg("b5")))                               # (B, 2*T)

    # Softmax over dim=2 of the (B, T, 2) view == pairwise softmax over
    # columns (2i, 2i+1): softmax(a over {a,b}) == 1 / (1 + exp(b - a)).
    n = y.shape[-1]
    partner_even = pltpu.roll(y, shift=n - 1, axis=1)   # y[:, j+1] at even j
    partner_odd = pltpu.roll(y, shift=1, axis=1)        # y[:, j-1] at odd  j
    col = jax.lax.broadcasted_iota(jnp.int32, y.shape, 1)
    partner = jnp.where(col % 2 == 0, partner_even, partner_odd)
    out_ref[...] = 1.0 / (1.0 + jnp.exp(partner - y))


# ----------------------------------------------------------------------------
# wrapper
# ----------------------------------------------------------------------------
def generator_forward(z, params):
    (w1, b1, w2, b2, g2, be2, w3, b3, g3, be3, w4, b4, g4, be4, w5, b5) = params
    B = z.shape[0]

    # Pack the 11 small per-feature vectors into a single f32 slab -> 1 DMA.
    vec = jnp.concatenate([b1, b2, g2, be2, b3, g3, be3, b4, g4, be4, b5], axis=1)
    assert vec.shape == (1, VEC_TOTAL)

    def vmem_spec():
        return pl.BlockSpec(memory_space=pltpu.MemorySpace.VMEM)

    return pl.pallas_call(
        generator_kernel,
        out_shape=jax.ShapeDtypeStruct((B, OUT_DIM), jnp.float32),
        # No grid: one invocation, whole arrays, single-buffered (no wasted
        # double-buffer VMEM, no useless "parallel" annotation).
        in_specs=[
            vmem_spec(),                          # z
            vmem_spec(), vmem_spec(), vmem_spec(),  # w1, w2, w3
            pl.BlockSpec(memory_space=pl.ANY),    # w4 stays in HBM (manual overlap copy)
            vmem_spec(),                          # w5
            vmem_spec(),                          # packed bias/gamma/beta slab
        ],
        out_specs=vmem_spec(),
        scratch_shapes=[
            pltpu.VMEM(w4.shape, w4.dtype),       # landing buffer for w4
            pltpu.SemaphoreType.DMA(()),          # its completion semaphore
        ],
    )(z, w1, w2, w3, w4, w5, vec)


# ----------------------------------------------------------------------------
# deterministic parameter init (PyTorch nn.Linear default: U(-1/sqrt(in), 1/sqrt(in)))
# Weights are stored in bf16 (HBM-traffic win); bias/gamma/beta stay f32.
# ----------------------------------------------------------------------------
def init_params(key):
    sizes = [(LATENT_DIM, 128), (128, 256), (256, 512), (512, 1024), (1024, OUT_DIM)]
    params = []
    for idx, (fan_in, fan_out) in enumerate(sizes):
        key, kw, kb = jax.random.split(key, 3)
        bound = 1.0 / np.sqrt(fan_in)
        w = jax.random.uniform(kw, (fan_in, fan_out), jnp.float32, -bound, bound)
        b = jax.random.uniform(kb, (1, fan_out), jnp.float32, -bound, bound)
        params.extend([w.astype(jnp.bfloat16), b])
        if idx in (1, 2, 3):  # layers followed by BatchNorm1d
            gamma = jnp.ones((1, fan_out), jnp.float32)
            beta = jnp.zeros((1, fan_out), jnp.float32)
            params.extend([gamma, beta])
    return params


# ----------------------------------------------------------------------------
# pure-JAX references (sanity checks)
# ----------------------------------------------------------------------------
def reference_forward_matched(z, params):
    """Mirrors the kernel's precision policy (bf16 matmul inputs, f32 accum)."""
    (w1, b1, w2, b2, g2, be2, w3, b3, g3, be3, w4, b4, g4, be4, w5, b5) = params

    def linear(x, w, b):
        return jnp.dot(x.astype(jnp.bfloat16), w,
                       preferred_element_type=jnp.float32) + b

    def leaky(x):
        return jnp.maximum(x, LRELU_SLOPE * x)

    def bn(x, g, be):
        mu = jnp.mean(x, axis=0, keepdims=True)
        var = jnp.mean(x * x, axis=0, keepdims=True) - mu * mu
        return (x - mu) * jax.lax.rsqrt(var + BN_EPS) * g + be

    h = leaky(linear(z, w1, b1))
    h = leaky(bn(linear(h, w2, b2), g2, be2))
    h = leaky(bn(linear(h, w3, b3), g3, be3))
    h = leaky(bn(linear(h, w4, b4), g4, be4))
    y = jnp.tanh(linear(h, w5, b5))
    y3 = y.reshape(y.shape[0], TOTAL_BITS, 2)
    partner = y3[..., ::-1].reshape(y.shape[0], -1)
    return 1.0 / (1.0 + jnp.exp(partner - y))


def reference_forward_f32(z, params):
    """Full-f32 math, exactly the PyTorch module structure (looser check)."""
    (w1, b1, w2, b2, g2, be2, w3, b3, g3, be3, w4, b4, g4, be4, w5, b5) = params
    w1, w2, w3, w4, w5 = (w.astype(jnp.float32) for w in (w1, w2, w3, w4, w5))

    def leaky(x):
        return jnp.where(x > 0, x, LRELU_SLOPE * x)

    def bn(x, g, be):
        mu = jnp.mean(x, axis=0, keepdims=True)
        var = jnp.mean((x - mu) ** 2, axis=0, keepdims=True)
        return (x - mu) / jnp.sqrt(var + BN_EPS) * g + be

    h = leaky(z @ w1 + b1)
    h = leaky(bn(h @ w2 + b2, g2, be2))
    h = leaky(bn(h @ w3 + b3, g3, be3))
    h = leaky(bn(h @ w4 + b4, g4, be4))
    y = jnp.tanh(h @ w5 + b5)
    y = y.reshape(y.shape[0], TOTAL_BITS, 2)
    y = jax.nn.softmax(y, axis=2)
    return y.reshape(y.shape[0], -1)


if __name__ == "__main__":
    key = jax.random.PRNGKey(0)
    key, kz = jax.random.split(key)
    z = jax.random.normal(kz, (BATCH, LATENT_DIM), jnp.float32)
    params = init_params(key)

    out = jax.block_until_ready(generator_forward(z, params))
    assert out.shape == (BATCH, OUT_DIM)

    # Tight check against a reference with the same bf16-weight precision policy.
    ref_m = jax.block_until_ready(reference_forward_matched(z, params))
    np.testing.assert_allclose(np.asarray(out), np.asarray(ref_m),
                               rtol=2e-3, atol=2e-3)

    # Loose check against full-f32 PyTorch-style math (bf16 weight rounding only).
    ref_f = jax.block_until_ready(reference_forward_f32(z, params))
    np.testing.assert_allclose(np.asarray(out), np.asarray(ref_f), atol=0.08)

    print("KERNEL_OK")
</pallas_src>

<mosaic_0001>
module attributes {stable_mosaic.version = 11 : i64} {
  func.func @generator_kernel(%arg0: memref<8x32xf32, #tpu.memory_space<vmem>>, %arg1: memref<32x128xbf16, #tpu.memory_space<vmem>>, %arg2: memref<128x256xbf16, #tpu.memory_space<vmem>>, %arg3: memref<256x512xbf16, #tpu.memory_space<vmem>>, %arg4: memref<512x1024xbf16, #tpu.memory_space<any>>, %arg5: memref<1024x32xbf16, #tpu.memory_space<vmem>>, %arg6: memref<1x5536xf32, #tpu.memory_space<vmem>>, %arg7: memref<8x32xf32, #tpu.memory_space<vmem>>, %arg8: memref<512x1024xbf16, #tpu.memory_space<vmem>>, %arg9: memref<!tpu.dma_semaphore, #tpu.memory_space<semaphore_mem>>) attributes {dimension_semantics = [], scalar_prefetch = 0 : i64, scratch_operands = 2 : i64, tpu.core_type = #tpu.core_type<tc>} {
    tpu.enqueue_dma source(%arg4 : memref<512x1024xbf16, #tpu.memory_space<any>>) target(%arg8 : memref<512x1024xbf16, #tpu.memory_space<vmem>>) target_semaphore(%arg9 : memref<!tpu.dma_semaphore, #tpu.memory_space<semaphore_mem>>)
    %c0 = arith.constant 0 : index
    %c0_0 = arith.constant 0 : index
    %0 = vector.load %arg0[%c0, %c0_0] : memref<8x32xf32, #tpu.memory_space<vmem>>, vector<8x32xf32>
    %c0_1 = arith.constant 0 : index
    %c0_2 = arith.constant 0 : index
    %1 = vector.load %arg1[%c0_1, %c0_2] : memref<32x128xbf16, #tpu.memory_space<vmem>>, vector<32x128xbf16>
    %c0_3 = arith.constant 0 : index
    %c0_4 = arith.constant 0 : index
    %2 = vector.load %arg6[%c0_3, %c0_4] : memref<1x5536xf32, #tpu.memory_space<vmem>>, vector<1x128xf32>
    %3 = arith.truncf %0 : vector<8x32xf32> to vector<8x32xbf16>
    %cst = arith.constant dense<0.000000e+00> : vector<8x128xf32>
    %4 = tpu.matmul %3, %1, %cst {dimension_numbers = #tpu.dot_dimension_numbers<[1], [0], [0], [1], [0, 0, 1, 1], [], []>} : vector<8x32xbf16>, vector<32x128xbf16>, vector<8x128xf32> -> vector<8x128xf32>
    %5 = vector.broadcast %2 : vector<1x128xf32> to vector<8x128xf32>
    %6 = arith.addf %4, %5 : vector<8x128xf32>
    %cst_5 = arith.constant 2.000000e-01 : f32
    %7 = vector.broadcast %cst_5 : f32 to vector<8x128xf32>
    %8 = arith.mulf %7, %6 : vector<8x128xf32>
    %9 = arith.maximumf %6, %8 : vector<8x128xf32>
    %c0_6 = arith.constant 0 : index
    %c0_7 = arith.constant 0 : index
    %10 = vector.load %arg2[%c0_6, %c0_7] : memref<128x256xbf16, #tpu.memory_space<vmem>>, vector<128x256xbf16>
    %c0_8 = arith.constant 0 : index
    %c128 = arith.constant 128 : index
    %11 = vector.load %arg6[%c0_8, %c128] : memref<1x5536xf32, #tpu.memory_space<vmem>>, vector<1x256xf32>
    %12 = arith.truncf %9 : vector<8x128xf32> to vector<8x128xbf16>
    %cst_9 = arith.constant dense<0.000000e+00> : vector<8x256xf32>
    %13 = tpu.matmul %12, %10, %cst_9 {dimension_numbers = #tpu.dot_dimension_numbers<[1], [0], [0], [1], [0, 0, 1, 1], [], []>} : vector<8x128xbf16>, vector<128x256xbf16>, vector<8x256xf32> -> vector<8x256xf32>
    %14 = vector.broadcast %11 : vector<1x256xf32> to vector<8x256xf32>
    %15 = arith.addf %13, %14 : vector<8x256xf32>
    %c0_10 = arith.constant 0 : index
    %c384 = arith.constant 384 : index
    %16 = vector.load %arg6[%c0_10, %c384] : memref<1x5536xf32, #tpu.memory_space<vmem>>, vector<1x256xf32>
    %c0_11 = arith.constant 0 : index
    %c640 = arith.constant 640 : index
    %17 = vector.load %arg6[%c0_11, %c640] : memref<1x5536xf32, #tpu.memory_space<vmem>>, vector<1x256xf32>
    %cst_12 = arith.constant dense<0.000000e+00> : vector<256xf32>
    %18 = vector.multi_reduction <add>, %15, %cst_12 [0] : vector<8x256xf32> to vector<256xf32>
    %19 = vector.shape_cast %18 : vector<256xf32> to vector<1x256xf32>
    %cst_13 = arith.constant 8.000000e+00 : f32
    %20 = vector.broadcast %cst_13 : f32 to vector<1x256xf32>
    %21 = arith.divf %19, %20 : vector<1x256xf32>
    %22 = arith.mulf %15, %15 : vector<8x256xf32>
    %cst_14 = arith.constant dense<0.000000e+00> : vector<256xf32>
    %23 = vector.multi_reduction <add>, %22, %cst_14 [0] : vector<8x256xf32> to vector<256xf32>
    %24 = vector.shape_cast %23 : vector<256xf32> to vector<1x256xf32>
    %cst_15 = arith.constant 8.000000e+00 : f32
    %25 = vector.broadcast %cst_15 : f32 to vector<1x256xf32>
    %26 = arith.divf %24, %25 : vector<1x256xf32>
    %27 = arith.mulf %21, %21 : vector<1x256xf32>
    %28 = arith.subf %26, %27 : vector<1x256xf32>
    %29 = vector.broadcast %21 : vector<1x256xf32> to vector<8x256xf32>
    %30 = arith.subf %15, %29 : vector<8x256xf32>
    %cst_16 = arith.constant 8.000000e-01 : f32
    %31 = vector.broadcast %cst_16 : f32 to vector<1x256xf32>
    %32 = arith.addf %28, %31 : vector<1x256xf32>
    %33 = math.rsqrt %32 : vector<1x256xf32>
    %34 = vector.broadcast %33 : vector<1x256xf32> to vector<8x256xf32>
    %35 = arith.mulf %30, %34 : vector<8x256xf32>
    %36 = vector.broadcast %16 : vector<1x256xf32> to vector<8x256xf32>
    %37 = arith.mulf %35, %36 : vector<8x256xf32>
    %38 = vector.broadcast %17 : vector<1x256xf32> to vector<8x256xf32>
    %39 = arith.addf %37, %38 : vector<8x256xf32>
    %cst_17 = arith.constant 2.000000e-01 : f32
    %40 = vector.broadcast %cst_17 : f32 to vector<8x256xf32>
    %41 = arith.mulf %40, %39 : vector<8x256xf32>
    %42 = arith.maximumf %39, %41 : vector<8x256xf32>
    %c0_18 = arith.constant 0 : index
    %c0_19 = arith.constant 0 : index
    %43 = vector.load %arg3[%c0_18, %c0_19] : memref<256x512xbf16, #tpu.memory_space<vmem>>, vector<256x512xbf16>
    %c0_20 = arith.constant 0 : index
    %c896 = arith.constant 896 : index
    %44 = vector.load %arg6[%c0_20, %c896] : memref<1x5536xf32, #tpu.memory_space<vmem>>, vector<1x512xf32>
    %45 = arith.truncf %42 : vector<8x256xf32> to vector<8x256xbf16>
    %cst_21 = arith.constant dense<0.000000e+00> : vector<8x512xf32>
    %46 = tpu.matmul %45, %43, %cst_21 {dimension_numbers = #tpu.dot_dimension_numbers<[1], [0], [0], [1], [0, 0, 1, 1], [], []>} : vector<8x256xbf16>, vector<256x512xbf16>, vector<8x512xf32> -> vector<8x512xf32>
    %47 = vector.broadcast %44 : vector<1x512xf32> to vector<8x512xf32>
    %48 = arith.addf %46, %47 : vector<8x512xf32>
    %c0_22 = arith.constant 0 : index
    %c1408 = arith.constant 1408 : index
    %49 = vector.load %arg6[%c0_22, %c1408] : memref<1x5536xf32, #tpu.memory_space<vmem>>, vector<1x512xf32>
    %c0_23 = arith.constant 0 : index
    %c1920 = arith.constant 1920 : index
    %50 = vector.load %arg6[%c0_23, %c1920] : memref<1x5536xf32, #tpu.memory_space<vmem>>, vector<1x512xf32>
    %cst_24 = arith.constant dense<0.000000e+00> : vector<512xf32>
    %51 = vector.multi_reduction <add>, %48, %cst_24 [0] : vector<8x512xf32> to vector<512xf32>
    %52 = vector.shape_cast %51 : vector<512xf32> to vector<1x512xf32>
    %cst_25 = arith.constant 8.000000e+00 : f32
    %53 = vector.broadcast %cst_25 : f32 to vector<1x512xf32>
    %54 = arith.divf %52, %53 : vector<1x512xf32>
    %55 = arith.mulf %48, %48 : vector<8x512xf32>
    %cst_26 = arith.constant dense<0.000000e+00> : vector<512xf32>
    %56 = vector.multi_reduction <add>, %55, %cst_26 [0] : vector<8x512xf32> to vector<512xf32>
    %57 = vector.shape_cast %56 : vector<512xf32> to vector<1x512xf32>
    %cst_27 = arith.constant 8.000000e+00 : f32
    %58 = vector.broadcast %cst_27 : f32 to vector<1x512xf32>
    %59 = arith.divf %57, %58 : vector<1x512xf32>
    %60 = arith.mulf %54, %54 : vector<1x512xf32>
    %61 = arith.subf %59, %60 : vector<1x512xf32>
    %62 = vector.broadcast %54 : vector<1x512xf32> to vector<8x512xf32>
    %63 = arith.subf %48, %62 : vector<8x512xf32>
    %cst_28 = arith.constant 8.000000e-01 : f32
    %64 = vector.broadcast %cst_28 : f32 to vector<1x512xf32>
    %65 = arith.addf %61, %64 : vector<1x512xf32>
    %66 = math.rsqrt %65 : vector<1x512xf32>
    %67 = vector.broadcast %66 : vector<1x512xf32> to vector<8x512xf32>
    %68 = arith.mulf %63, %67 : vector<8x512xf32>
    %69 = vector.broadcast %49 : vector<1x512xf32> to vector<8x512xf32>
    %70 = arith.mulf %68, %69 : vector<8x512xf32>
    %71 = vector.broadcast %50 : vector<1x512xf32> to vector<8x512xf32>
    %72 = arith.addf %70, %71 : vector<8x512xf32>
    %cst_29 = arith.constant 2.000000e-01 : f32
    %73 = vector.broadcast %cst_29 : f32 to vector<8x512xf32>
    %74 = arith.mulf %73, %72 : vector<8x512xf32>
    %75 = arith.maximumf %72, %74 : vector<8x512xf32>
    tpu.wait_dma2 semaphore(%arg9 : memref<!tpu.dma_semaphore, #tpu.memory_space<semaphore_mem>>) src(%arg4 : memref<512x1024xbf16, #tpu.memory_space<any>>) dst(%arg8 : memref<512x1024xbf16, #tpu.memory_space<vmem>>)
    %c0_30 = arith.constant 0 : index
    %c0_31 = arith.constant 0 : index
    %76 = vector.load %arg8[%c0_30, %c0_31] : memref<512x1024xbf16, #tpu.memory_space<vmem>>, vector<512x1024xbf16>
    %c0_32 = arith.constant 0 : index
    %c2432 = arith.constant 2432 : index
    %77 = vector.load %arg6[%c0_32, %c2432] : memref<1x5536xf32, #tpu.memory_space<vmem>>, vector<1x1024xf32>
    %78 = arith.truncf %75 : vector<8x512xf32> to vector<8x512xbf16>
    %cst_33 = arith.constant dense<0.000000e+00> : vector<8x1024xf32>
    %79 = tpu.matmul %78, %76, %cst_33 {dimension_numbers = #tpu.dot_dimension_numbers<[1], [0], [0], [1], [0, 0, 1, 1], [], []>} : vector<8x512xbf16>, vector<512x1024xbf16>, vector<8x1024xf32> -> vector<8x1024xf32>
    %80 = vector.broadcast %77 : vector<1x1024xf32> to vector<8x1024xf32>
    %81 = arith.addf %79, %80 : vector<8x1024xf32>
    %c0_34 = arith.constant 0 : index
    %c3456 = arith.constant 3456 : index
    %82 = vector.load %arg6[%c0_34, %c3456] : memref<1x5536xf32, #tpu.memory_space<vmem>>, vector<1x1024xf32>
    %c0_35 = arith.constant 0 : index
    %c4480 = arith.constant 4480 : index
    %83 = vector.load %arg6[%c0_35, %c4480] : memref<1x5536xf32, #tpu.memory_space<vmem>>, vector<1x1024xf32>
    %cst_36 = arith.constant dense<0.000000e+00> : vector<1024xf32>
    %84 = vector.multi_reduction <add>, %81, %cst_36 [0] : vector<8x1024xf32> to vector<1024xf32>
    %85 = vector.shape_cast %84 : vector<1024xf32> to vector<1x1024xf32>
    %cst_37 = arith.constant 8.000000e+00 : f32
    %86 = vector.broadcast %cst_37 : f32 to vector<1x1024xf32>
    %87 = arith.divf %85, %86 : vector<1x1024xf32>
    %88 = arith.mulf %81, %81 : vector<8x1024xf32>
    %cst_38 = arith.constant dense<0.000000e+00> : vector<1024xf32>
    %89 = vector.multi_reduction <add>, %88, %cst_38 [0] : vector<8x1024xf32> to vector<1024xf32>
    %90 = vector.shape_cast %89 : vector<1024xf32> to vector<1x1024xf32>
    %cst_39 = arith.constant 8.000000e+00 : f32
    %91 = vector.broadcast %cst_39 : f32 to vector<1x1024xf32>
    %92 = arith.divf %90, %91 : vector<1x1024xf32>
    %93 = arith.mulf %87, %87 : vector<1x1024xf32>
    %94 = arith.subf %92, %93 : vector<1x1024xf32>
    %95 = vector.broadcast %87 : vector<1x1024xf32> to vector<8x1024xf32>
    %96 = arith.subf %81, %95 : vector<8x1024xf32>
    %cst_40 = arith.constant 8.000000e-01 : f32
    %97 = vector.broadcast %cst_40 : f32 to vector<1x1024xf32>
    %98 = arith.addf %94, %97 : vector<1x1024xf32>
    %99 = math.rsqrt %98 : vector<1x1024xf32>
    %100 = vector.broadcast %99 : vector<1x1024xf32> to vector<8x1024xf32>
    %101 = arith.mulf %96, %100 : vector<8x1024xf32>
    %102 = vector.broadcast %82 : vector<1x1024xf32> to vector<8x1024xf32>
    %103 = arith.mulf %101, %102 : vector<8x1024xf32>
    %104 = vector.broadcast %83 : vector<1x1024xf32> to vector<8x1024xf32>
    %105 = arith.addf %103, %104 : vector<8x1024xf32>
    %cst_41 = arith.constant 2.000000e-01 : f32
    %106 = vector.broadcast %cst_41 : f32 to vector<8x1024xf32>
    %107 = arith.mulf %106, %105 : vector<8x1024xf32>
    %108 = arith.maximumf %105, %107 : vector<8x1024xf32>
    %c0_42 = arith.constant 0 : index
    %c0_43 = arith.constant 0 : index
    %109 = vector.load %arg5[%c0_42, %c0_43] : memref<1024x32xbf16, #tpu.memory_space<vmem>>, vector<1024x32xbf16>
    %c0_44 = arith.constant 0 : index
    %c5504 = arith.constant 5504 : index
    %110 = vector.load %arg6[%c0_44, %c5504] : memref<1x5536xf32, #tpu.memory_space<vmem>>, vector<1x32xf32>
    %111 = arith.truncf %108 : vector<8x1024xf32> to vector<8x1024xbf16>
    %cst_45 = arith.constant dense<0.000000e+00> : vector<8x32xf32>
    %112 = tpu.matmul %111, %109, %cst_45 {dimension_numbers = #tpu.dot_dimension_numbers<[1], [0], [0], [1], [0, 0, 1, 1], [], []>} : vector<8x1024xbf16>, vector<1024x32xbf16>, vector<8x32xf32> -> vector<8x32xf32>
    %113 = vector.broadcast %110 : vector<1x32xf32> to vector<8x32xf32>
    %114 = arith.addf %112, %113 : vector<8x32xf32>
    %115 = math.tanh %114 : vector<8x32xf32>
    %c31_i32 = arith.constant 31 : i32
    %116 = tpu.dynamic_rotate %115 by %c31_i32 dim 1 : vector<8x32xf32>, i32 -> vector<8x32xf32>
    %c1_i32 = arith.constant 1 : i32
    %117 = tpu.dynamic_rotate %115 by %c1_i32 dim 1 : vector<8x32xf32>, i32 -> vector<8x32xf32>
    %118 = tpu.iota {dimensions = array<i32: 1>} : vector<8x32xi32>
    %c2_i32 = arith.constant 2 : i32
    %c0_i32 = arith.constant 0 : i32
    %119 = arith.cmpi eq, %c2_i32, %c0_i32 : i32
    %c1_i32_46 = arith.constant 1 : i32
    %120 = arith.select %119, %c1_i32_46, %c2_i32 : i32
    %121 = vector.broadcast %120 : i32 to vector<8x32xi32>
    %122 = arith.remsi %118, %121 : vector<8x32xi32>
    %c0_i32_47 = arith.constant 0 : i32
    %123 = vector.broadcast %c0_i32_47 : i32 to vector<8x32xi32>
    %124 = arith.cmpi ne, %122, %123 : vector<8x32xi32>
    %c0_i32_48 = arith.constant 0 : i32
    %125 = vector.broadcast %c0_i32_48 : i32 to vector<8x32xi32>
    %126 = arith.cmpi slt, %122, %125 : vector<8x32xi32>
    %c0_i32_49 = arith.constant 0 : i32
    %127 = arith.cmpi slt, %120, %c0_i32_49 : i32
    %128 = vector.broadcast %127 : i1 to vector<8x32xi1>
    %129 = vector.broadcast %128 : vector<8x32xi1> to vector<8x32xi1>
    %130 = arith.xori %126, %129 : vector<8x32xi1>
    %131 = arith.andi %130, %124 : vector<8x32xi1>
    %132 = vector.broadcast %120 : i32 to vector<8x32xi32>
    %133 = arith.addi %122, %132 : vector<8x32xi32>
    %134 = arith.select %131, %133, %122 : vector<8x32xi1>, vector<8x32xi32>
    %c0_i32_50 = arith.constant 0 : i32
    %135 = vector.broadcast %c0_i32_50 : i32 to vector<8x32xi32>
    %136 = arith.cmpi eq, %134, %135 : vector<8x32xi32>
    %137 = arith.select %136, %116, %117 : vector<8x32xi1>, vector<8x32xf32>
    %138 = arith.subf %137, %115 : vector<8x32xf32>
    %139 = math.exp %138 : vector<8x32xf32>
    %cst_51 = arith.constant 1.000000e+00 : f32
    %140 = vector.broadcast %cst_51 : f32 to vector<8x32xf32>
    %141 = arith.addf %140, %139 : vector<8x32xf32>
    %cst_52 = arith.constant 1.000000e+00 : f32
    %142 = vector.broadcast %cst_52 : f32 to vector<8x32xf32>
    %143 = arith.divf %142, %141 : vector<8x32xf32>
    %c0_53 = arith.constant 0 : index
    %c0_54 = arith.constant 0 : index
    %144 = vector.load %arg7[%c0_53, %c0_54] : memref<8x32xf32, #tpu.memory_space<vmem>>, vector<8x32xf32>
    tpu.vector_store %arg7[%c0_53, %c0_54], %143 {strides = array<i32>} : memref<8x32xf32, #tpu.memory_space<vmem>>, vector<8x32xf32>,
    return
  }
}

</mosaic_0001>

<bundles_post_ra>
// kernel: tpu_custom_call.1
= control target key start
LH: loop header
LB: loop body
LE: loop exit
PB: predicated region body
PF: predicated region fallthrough
CT: control target
= control target key end

     0   :  { %12 = vsyncpa [#allocation5], 0  ;;  %s5499_s0 = inlined_call_operand.hbm [shape: f32[8,32], index: 0, kind: input, shape index: {}]   ;;  %s5500_s1 = inlined_call_operand.hbm [shape: bf16[32,128], index: 1, kind: input, shape index: {}]   ;;  %s5501_s2 = inlined_call_operand.vmem [shape: bf16[128,256], index: 2, kind: input, shape index: {}]   ;;  %s5502_s3 = inlined_call_operand.vmem [shape: bf16[256,512], index: 3, kind: input, shape index: {}]   ;;  %s5503_s4 = inlined_call_operand.hbm [shape: bf16[512,1024], index: 4, kind: input, shape index: {}]   ;;  %s5504_s5 = inlined_call_operand.vmem [shape: bf16[1024,32], index: 5, kind: input, shape index: {}]   ;;  %s5505_s6 = inlined_call_operand.hbm [shape: f32[1,5536], index: 6, kind: input, shape index: {}]   ;;  %s5506_s7 = inlined_call_operand.hbm [shape: f32[8,32], index: 7, kind: output, shape index: {}]  }
   0x1   :  { %13 = vsyncpa [#allocation8], 0 }
   0x2   :  { %14 = vsyncpa [#allocation6], 0  ;;  %s4795_s24 = smov [#allocation7]  }
   0x3   :  { %s30_s25 = sshll.u32 %s4795_s24, 4  ;;  %s31_s25 = int_to_ptr.vmem [resolvable:$true] %s30_s25 }
   0x4   :  { %s4695_s26 = scalar_lea.vmem %s31_s25, 256  ;;  %p4700_p1 = scmp.lt.s32.totalorder %s31_s25, %s31_s25 }
   0x5   :  { %p4696_p0 = scmp.ne.s32.totalorder %s31_s25, %s4695_s26  ;;  %p4701_p2 = scmp.lt.s32.totalorder %s4695_s26, %s4695_s26 }
   0x7   :  { %p4702_p3 = por %p4701_p2, %p4700_p1 }
   0x9   :  { %p4703_p4 = pnand %p4702_p3, %p4696_p0 }
   0xb   :  { %4706 = shalt.err (!%p4703_p4)
}
   0xc   :  { %s4796_s27 = smov 64   ;;  %s4797_s28 = smov 4  }
   0xd   :  { %36 = dma.hbm_to_vmem [thread:$0]  %s5500_s1, 256, %s31_s25, [#allocation8], %s4796_s27, %s4796_s27, %s4797_s28  }
   0xe   :  { %s4798_s8 = smov [#allocation4]   ;;  %s4799_s10 = smov [#allocation9]  }
   0xf   :  { %s21_s9 = sshll.u32 %s4798_s8, 4  ;;  %s49_s11 = sshll.u32 %s4799_s10, 4  ;;  %s22_s9 = int_to_ptr.vmem [resolvable:$true] %s21_s9  ;;  %s50_s11 = int_to_ptr.vmem [resolvable:$true] %s49_s11 }
  0x10   :  { %s4715_s12 = scalar_lea.vmem %s22_s9, 128  ;;  %p4720_p6 = scmp.lt.s32.totalorder %s22_s9, %s22_s9 }
  0x11   :  { %p4716_p5 = scmp.ne.s32.totalorder %s22_s9, %s4715_s12  ;;  %p4721_p7 = scmp.lt.s32.totalorder %s4715_s12, %s4715_s12 }
  0x13   :  { %p4722_p8 = por %p4721_p7, %p4720_p6 }
  0x15   :  { %p4723_p9 = pnand %p4722_p8, %p4716_p5 }
  0x17   :  { %4726 = shalt.err (!%p4723_p9)
}
  0x18   :  { %24 = dma.hbm_to_vmem [thread:$0]  %s5499_s0, 128, %s22_s9, [#allocation5]  }
  0x19   :  { %s4735_s15 = scalar_lea.vmem %s50_s11, 704  ;;  %p4740_p11 = scmp.lt.s32.totalorder %s50_s11, %s50_s11 }
  0x1a   :  { %p4736_p10 = scmp.ne.s32.totalorder %s50_s11, %s4735_s15  ;;  %p4741_p12 = scmp.lt.s32.totalorder %s4735_s15, %s4735_s15 }
  0x1c   :  { %p4742_p13 = por %p4741_p12, %p4740_p11 }
  0x1e   :  { %p4743_p0 = pnand %p4742_p13, %p4736_p10 }
  0x20   :  { %4746 = shalt.err (!%p4743_p0)
}
  0x21   :  { %52 = dma.hbm_to_vmem [thread:$0]  %s5505_s6, 704, %s50_s11, [#allocation8]  }
  0x22   :  { %4787 = dma.done.wait [#allocation5], 128  }
  0x23   :  { %4788 = vsyncadd [#allocation5], 4294967168 }
  0x24   :  { %4789 = dma.done.wait [#allocation8], 960  }
  0x25   :  { %4790 = vsyncadd [#allocation8], 4294966336  ;;  %v4800_v0 = vmov 0.0   ;;  %vm4801_vm0 = vmmov 0   ;;  %v4467_v1 = vld [vmem:[#allocation7 + $0x8] sm:$0xff]   ;;  %v4468_v2 = vld [vmem:[#allocation7] sm:$0xff]  }
  0x26   :  { %4446 = vmatprep.subr.bf16.mxu0 %v4800_v0  ;;  %4450 = vmatprep.mubr.msk.bf16.mxu0 %vm4801_vm0, %v4800_v0  ;;  %v74_v3 = vld [vmem:[#allocation4] sm:$0xff]  ;;  %v4469_v4 = vld [vmem:[%s5501_s2 + $0x74] ss:$8 sps:$4 sm:$0xff]   ;;  %v4471_v5 = vld [vmem:[%s5501_s2 + $0x70] ss:$8 sps:$4 sm:$0xff]   ;;  %vm99_vm1 = vcmask 261120  }
  0x27   :  { %4447 = vmatpush3.bf16.msra.mxu0 %v4467_v1  ;;  %v4472_v6 = vld [vmem:[%s5501_s2 + $0x64] ss:$8 sps:$4 sm:$0xff]   ;;  %v80_v7 = vpack.c.bf16 %v74_v3, %v74_v3  ;;  %254 = vmatprep.subr.bf16.mxu1 %v4469_v4  ;;  %v4474_v8 = vld [vmem:[%s5501_s2 + $0x60] ss:$8 sps:$4 sm:$0xff]   ;;  %v4475_v9 = vld [vmem:[%s5501_s2 + $0x54] ss:$8 sps:$4 sm:$0xff]  }
  0x28   :  { %4448 = vmatprep.subr.bf16.mxu0 %v4800_v0  ;;  %255 = vmatpush1.bf16.msra.mxu1 %v4471_v5  ;;  %v4477_v10 = vld [vmem:[%s5501_s2 + $0x50] ss:$8 sps:$4 sm:$0xff]   ;;  %v4478_v11 = vld [vmem:[%s5501_s2 + $0x44] ss:$8 sps:$4 sm:$0xff]   ;;  %v4480_v12 = vld [vmem:[%s5501_s2 + $0x40] ss:$8 sps:$4 sm:$0xff]  }
  0x29   :  { %256 = vmatprep.subr.bf16.mxu1 %v4472_v6  ;;  %v4481_v13 = vld [vmem:[%s5501_s2 + $0x34] ss:$8 sps:$4 sm:$0xff]   ;;  %v4483_v14 = vld [vmem:[%s5501_s2 + $0x30] ss:$8 sps:$4 sm:$0xff]   ;;  %v4484_v15 = vld [vmem:[%s5501_s2 + $0x24] ss:$8 sps:$4 sm:$0xff]  }
  0x2a   :  { %v4486_v16 = vld [vmem:[%s5501_s2 + $0x20] ss:$8 sps:$4 sm:$0xff]   ;;  %v4487_v17 = vld [vmem:[%s5501_s2 + $0x14] ss:$8 sps:$4 sm:$0xff]   ;;  %v4489_v18 = vld [vmem:[%s5501_s2 + $0x10] ss:$8 sps:$4 sm:$0xff]  }
  0x2b   :  { %4449 = vmatpush3.bf16.msra.mxu0 %v4468_v2  ;;  %v4490_v19 = vld [vmem:[%s5501_s2 + $0x4] ss:$8 sps:$4 sm:$0xff]   ;;  %v4492_v20 = vld [vmem:[%s5501_s2] ss:$8 sps:$4 sm:$0xff]   ;;  %v4802_v21 = vmov 0  }
  0x2c   :  { %257 = vmatpush1.bf16.msra.mxu1 %v4474_v8  ;;  %286 = vmatprep.mubr.bf16.mxu1 %v4802_v21  ;;  %v4493_v22 = vld [vmem:[%s5502_s3 + $0xe0] ss:$16 sps:$4 sm:$0xff]   ;;  %v4495_v23 = vld [vmem:[%s5502_s3 + $0xe4] ss:$16 sps:$4 sm:$0xff]   ;;  %v4498_v24 = vld [vmem:[%s5502_s3 + $0xec] ss:$16 sps:$4 sm:$0xff]  }
  0x2d   :  { %258 = vmatprep.subr.bf16.mxu1 %v4475_v9  ;;  %v4501_v25 = vld [vmem:[%s5502_s3 + $0xc4] ss:$16 sps:$4 sm:$0xff]   ;;  %778 = vmatprep.subr.bf16.mxu0 %v4495_v23  ;;  %v4499_v26 = vld [vmem:[%s5502_s3 + $0xc0] ss:$16 sps:$4 sm:$0xff]   ;;  %v3949_v29 = vld [vmem:[#allocation9] ss:$0 sm:$0xff] }
  0x2e   :  { %4451 = vmatmul.mubr.msk.bf16.vlgmr.msra.gmra.mxu0 %vm99_vm1, %v80_v7  ;;  %v4507_v27 = vld [vmem:[%s5502_s3 + $0xa4] ss:$16 sps:$4 sm:$0xff]   ;;  %v4505_v28 = vld [vmem:[%s5502_s3 + $0xa0] ss:$16 sps:$4 sm:$0xff]   ;;  %v4496_v37 = vld [vmem:[%s5502_s3 + $0xe8] ss:$16 sps:$4 sm:$0xff]  }
  0x2f   :  { %779 = vmatpush1.bf16.msra.mxu0 %v4493_v22  ;;  %v4504_v39 = vld [vmem:[%s5502_s3 + $0xcc] ss:$16 sps:$4 sm:$0xff]   ;;  %v4502_v40 = vld [vmem:[%s5502_s3 + $0xc8] ss:$16 sps:$4 sm:$0xff]   ;;  %v4513_v43 = vld [vmem:[%s5502_s3 + $0x84] ss:$16 sps:$4 sm:$0xff]  }
  0x30   :  { %259 = vmatpush1.bf16.msra.mxu1 %v4477_v10  ;;  %780 = vmatprep.subr.bf16.mxu0 %v4501_v25  ;;  %v4510_v41 = vld [vmem:[%s5502_s3 + $0xac] ss:$16 sps:$4 sm:$0xff]   ;;  %v4508_v42 = vld [vmem:[%s5502_s3 + $0xa8] ss:$16 sps:$4 sm:$0xff]   ;;  %v4511_v45 = vld [vmem:[%s5502_s3 + $0x80] ss:$16 sps:$4 sm:$0xff]  }
  0x31   :  { %260 = vmatprep.subr.bf16.mxu1 %v4478_v11  ;;  %v4516_v44 = vld [vmem:[%s5502_s3 + $0x8c] ss:$16 sps:$4 sm:$0xff]   ;;  %v4514_v46 = vld [vmem:[%s5502_s3 + $0x88] ss:$16 sps:$4 sm:$0xff]   ;;  %v4519_v47 = vld [vmem:[%s5502_s3 + $0x64] ss:$16 sps:$4 sm:$0xff]  }
  0x32   :  { %v4522_v48 = vld [vmem:[%s5502_s3 + $0x6c] ss:$16 sps:$4 sm:$0xff]   ;;  %v4517_v49 = vld [vmem:[%s5502_s3 + $0x60] ss:$16 sps:$4 sm:$0xff]   ;;  %v4520_v50 = vld [vmem:[%s5502_s3 + $0x68] ss:$16 sps:$4 sm:$0xff]  }
  0x33   :  { %781 = vmatpush1.bf16.msra.mxu0 %v4499_v26  ;;  %v4525_v51 = vld [vmem:[%s5502_s3 + $0x44] ss:$16 sps:$4 sm:$0xff]   ;;  %v4528_v52 = vld [vmem:[%s5502_s3 + $0x4c] ss:$16 sps:$4 sm:$0xff]   ;;  %v4523_v53 = vld [vmem:[%s5502_s3 + $0x40] ss:$16 sps:$4 sm:$0xff]  }
  0x34   :  { %261 = vmatpush1.bf16.msra.mxu1 %v4480_v12  ;;  %782 = vmatprep.subr.bf16.mxu0 %v4507_v27  ;;  %v4526_v54 = vld [vmem:[%s5502_s3 + $0x48] ss:$16 sps:$4 sm:$0xff]   ;;  %v4531_v55 = vld [vmem:[%s5502_s3 + $0x24] ss:$16 sps:$4 sm:$0xff]   ;;  %v4534_v56 = vld [vmem:[%s5502_s3 + $0x2c] ss:$16 sps:$4 sm:$0xff]  }
  0x35   :  { %262 = vmatprep.subr.bf16.mxu1 %v4481_v13  ;;  %v4529_v57 = vld [vmem:[%s5502_s3 + $0x20] ss:$16 sps:$4 sm:$0xff]   ;;  %v4532_v58 = vld [vmem:[%s5502_s3 + $0x28] ss:$16 sps:$4 sm:$0xff]   ;;  %v4537_v59 = vld [vmem:[%s5502_s3 + $0x4] ss:$16 sps:$4 sm:$0xff]  }
  0x36   :  { %v4540_v60 = vld [vmem:[%s5502_s3 + $0xc] ss:$16 sps:$4 sm:$0xff]   ;;  %v4535_v61 = vld [vmem:[%s5502_s3] ss:$16 sps:$4 sm:$0xff]   ;;  %v4538_v62 = vld [vmem:[%s5502_s3 + $0x8] ss:$16 sps:$4 sm:$0xff]  }
  0x37   :  { %783 = vmatpush1.bf16.msra.mxu0 %v4505_v28  ;;  %v4543_v63 = vld [vmem:[%s5502_s3 + $0x1e4] ss:$16 sps:$4 sm:$0xff]   ;;  %v4546_v0 = vld [vmem:[%s5502_s3 + $0x1ec] ss:$16 sps:$4 sm:$0xff]   ;;  %v4541_v1 = vld [vmem:[%s5502_s3 + $0x1e0] ss:$16 sps:$4 sm:$0xff]  }
  0x38   :  { %263 = vmatpush1.bf16.msra.mxu1 %v4483_v14  ;;  %784 = vmatprep.subr.bf16.mxu0 %v4513_v43  ;;  %v4544_v2 = vld [vmem:[%s5502_s3 + $0x1e8] ss:$16 sps:$4 sm:$0xff]   ;;  %v4549_v3 = vld [vmem:[%s5502_s3 + $0x1c4] ss:$16 sps:$4 sm:$0xff]   ;;  %v4552_v4 = vld [vmem:[%s5502_s3 + $0x1cc] ss:$16 sps:$4 sm:$0xff]  }
  0x39   :  { %264 = vmatprep.subr.bf16.mxu1 %v4484_v15  ;;  %v4547_v5 = vld [vmem:[%s5502_s3 + $0x1c0] ss:$16 sps:$4 sm:$0xff]   ;;  %v4550_v6 = vld [vmem:[%s5502_s3 + $0x1c8] ss:$16 sps:$4 sm:$0xff]   ;;  %v4555_v7 = vld [vmem:[%s5502_s3 + $0x1a4] ss:$16 sps:$4 sm:$0xff]  }
  0x3a   :  { %v4558_v8 = vld [vmem:[%s5502_s3 + $0x1ac] ss:$16 sps:$4 sm:$0xff]   ;;  %v4553_v9 = vld [vmem:[%s5502_s3 + $0x1a0] ss:$16 sps:$4 sm:$0xff]   ;;  %v4556_v10 = vld [vmem:[%s5502_s3 + $0x1a8] ss:$16 sps:$4 sm:$0xff]  }
  0x3b   :  { %785 = vmatpush1.bf16.msra.mxu0 %v4511_v45  ;;  %v4561_v11 = vld [vmem:[%s5502_s3 + $0x184] ss:$16 sps:$4 sm:$0xff]   ;;  %v4564_v12 = vld [vmem:[%s5502_s3 + $0x18c] ss:$16 sps:$4 sm:$0xff]   ;;  %v4559_v13 = vld [vmem:[%s5502_s3 + $0x180] ss:$16 sps:$4 sm:$0xff]  }
  0x3c   :  { %265 = vmatpush1.bf16.msra.mxu1 %v4486_v16  ;;  %786 = vmatprep.subr.bf16.mxu0 %v4519_v47  ;;  %v4562_v14 = vld [vmem:[%s5502_s3 + $0x188] ss:$16 sps:$4 sm:$0xff]   ;;  %v4567_v15 = vld [vmem:[%s5502_s3 + $0x164] ss:$16 sps:$4 sm:$0xff]   ;;  %v4570_v16 = vld [vmem:[%s5502_s3 + $0x16c] ss:$16 sps:$4 sm:$0xff]  }
  0x3d   :  { %266 = vmatprep.subr.bf16.mxu1 %v4487_v17  ;;  %v4565_v17 = vld [vmem:[%s5502_s3 + $0x160] ss:$16 sps:$4 sm:$0xff]   ;;  %v4574_v21 = vld [vmem:[%s5502_s3 + $0x148] ss:$16 sps:$4 sm:$0xff]   ;;  %v4576_v22 = vld [vmem:[%s5502_s3 + $0x14c] ss:$16 sps:$4 sm:$0xff]  }
  0x3e   :  { %v4579_v23 = vld [vmem:[%s5502_s3 + $0x124] ss:$16 sps:$4 sm:$0xff]   ;;  %v4577_v25 = vld [vmem:[%s5502_s3 + $0x120] ss:$16 sps:$4 sm:$0xff]   ;;  %v4580_v26 = vld [vmem:[%s5502_s3 + $0x128] ss:$16 sps:$4 sm:$0xff]  }
  0x3f   :  { %787 = vmatpush1.bf16.msra.mxu0 %v4517_v49  ;;  %v4585_v27 = vld [vmem:[%s5502_s3 + $0x104] ss:$16 sps:$4 sm:$0xff]   ;;  %v4588_v28 = vld [vmem:[%s5502_s3 + $0x10c] ss:$16 sps:$4 sm:$0xff]  }
  0x40   :  { %267 = vmatpush1.bf16.msra.mxu1 %v4489_v18  ;;  %788 = vmatprep.subr.bf16.mxu0 %v4525_v51  ;;  %v4568_v18 = vld [vmem:[%s5502_s3 + $0x168] ss:$16 sps:$4 sm:$0xff]  }
  0x41   :  { %268 = vmatprep.subr.bf16.mxu1 %v4490_v19  ;;  %v4573_v19 = vld [vmem:[%s5502_s3 + $0x144] ss:$16 sps:$4 sm:$0xff]  }
  0x43   :  { %789 = vmatpush1.bf16.msra.mxu0 %v4523_v53 }
  0x44   :  { %269 = vmatpush1.bf16.msra.mxu1 %v4492_v20  ;;  %790 = vmatprep.subr.bf16.mxu0 %v4531_v55  ;;  %v4571_v20 = vld [vmem:[%s5502_s3 + $0x140] ss:$16 sps:$4 sm:$0xff]  }
  0x45   :  { %819 = vmatprep.subr.bf16.mxu1 %v4498_v24  ;;  %v4582_v24 = vld [vmem:[%s5502_s3 + $0x12c] ss:$16 sps:$4 sm:$0xff]  }
  0x47   :  { %791 = vmatpush1.bf16.msra.mxu0 %v4529_v57 }
  0x48   :  { %792 = vmatprep.subr.bf16.mxu0 %v4537_v59 }
  0x4b   :  { %793 = vmatpush1.bf16.msra.mxu0 %v4535_v61 }
  0x4c   :  { %794 = vmatprep.subr.bf16.mxu0 %v4543_v63 }
  0x4f   :  { %795 = vmatpush2.bf16.msra.mxu0 %v4541_v1 }
  0x50   :  { %796 = vmatprep.subr.bf16.mxu0 %v4549_v3 }
  0x53   :  { %797 = vmatpush2.bf16.msra.mxu0 %v4547_v5 }
  0x54   :  { %798 = vmatprep.subr.bf16.mxu0 %v4555_v7 }
  0x57   :  { %799 = vmatpush2.bf16.msra.mxu0 %v4553_v9 }
  0x58   :  { %800 = vmatprep.subr.bf16.mxu0 %v4561_v11 }
  0x5b   :  { %801 = vmatpush2.bf16.msra.mxu0 %v4559_v13 }
  0x5c   :  { %802 = vmatprep.subr.bf16.mxu0 %v4567_v15 }
  0x5f   :  { %803 = vmatpush2.bf16.msra.mxu0 %v4565_v17  ;;  %v296_v17 = vld [vmem:[#allocation9 + $0x5] sm:$0x3] }
  0x60   :  { %804 = vmatprep.subr.bf16.mxu0 %v4573_v19 }
  0x63   :  { %805 = vmatpush2.bf16.msra.mxu0 %v4571_v20 }
  0x64   :  { %806 = vmatprep.subr.bf16.mxu0 %v4579_v23 }
  0x67   :  { %807 = vmatpush2.bf16.msra.mxu0 %v4577_v25 }
  0x68   :  { %808 = vmatprep.subr.bf16.mxu0 %v4585_v27 }
  0xee   :  { %v137_v30 = vpop.f32.mrf.mxu0 }
  0xef   :  { %v138_v31 = vadd.f32 %v3949_v29, %v137_v30  ;;  %v4583_v29 = vld [vmem:[%s5502_s3 + $0x100] ss:$16 sps:$4 sm:$0xff]   ;;  %v4586_v30 = vld [vmem:[%s5502_s3 + $0x108] ss:$16 sps:$4 sm:$0xff]   ;;  %s4803_s3 = smov [#allocation2]  }
  0xf0   :  { %v4452_v32 = vpop.f32.mrf.mxu0  ;;  %809 = vmatpush2.bf16.msra.mxu0 %v4583_v29  ;;  %s70_s16 = sshll.u32 %s4803_s3, 4  ;;  %s71_s16 = int_to_ptr.vmem [resolvable:$true] %s70_s16 }
  0xf1   :  { %v143_v33 = vmul.f32 0.2, %v138_v31  ;;  %s4755_s0 = scalar_lea.vmem %s71_s16, 32768  ;;  %p4760_p2 = scmp.lt.s32.totalorder %s71_s16, %s71_s16 }
  0xf2   :  { %v140_v34 = vpop.f32.mrf.mxu0  ;;  %p4756_p1 = scmp.ne.s32.totalorder %s71_s16, %s4755_s0  ;;  %p4761_p3 = scmp.lt.s32.totalorder %s4755_s0, %s4755_s0 }
  0xf3   :  { %v144_v35 = vmax.f32 %v138_v31, %v143_v33  ;;  %v164_v31 = vlaneseq  ;;  %v161_v34 = vld [vmem:[#allocation9 + $0x1] sm:$0x3] }
  0xf4   :  { %v4453_v36 = vpop.f32.mrf.mxu0  ;;  %p4762_p4 = por %p4761_p3, %p4760_p2 }
  0xf5   :  { %v162_v38 = vpack.c.bf16 %v144_v35, %v144_v35  ;;  %v5099_v32 = vshrl.u32 %v164_v31, 7 }
  0xf6   :  { %p4763_p5 = pnand %p4762_p4, %p4756_p1 }
  0xf7   :  { %287 = vmatmul.mubr.bf16.vlgmr.msra.gmra.mxu1 %v162_v38  ;;  %v5102_v33 = vsub.s32 0, %v5099_v32  ;;  %v5105_v35 = vsub.s32 1, %v5099_v32 }
  0xf8   :  { %820 = vmatpush1.bf16.msra.mxu1 %v4496_v37 }
  0xf9   :  { %821 = vmatprep.subr.bf16.mxu1 %v4504_v39  ;;  %v167_v36 = vrot.slane %v161_v34, %v5102_v33  ;;  %v171_v37 = vrot.slane %v161_v34, %v5105_v35 }
  0xfc   :  { %822 = vmatpush1.bf16.msra.mxu1 %v4502_v40 }
  0xfd   :  { %823 = vmatprep.subr.bf16.mxu1 %v4510_v41 }
 0x100   :  { %824 = vmatpush1.bf16.msra.mxu1 %v4508_v42 }
 0x101   :  { %825 = vmatprep.subr.bf16.mxu1 %v4516_v44 }
 0x104   :  { %826 = vmatpush1.bf16.msra.mxu1 %v4514_v46 }
 0x105   :  { %827 = vmatprep.subr.bf16.mxu1 %v4522_v48 }
 0x108   :  { %828 = vmatpush1.bf16.msra.mxu1 %v4520_v50 }
 0x109   :  { %829 = vmatprep.subr.bf16.mxu1 %v4528_v52 }
 0x10c   :  { %830 = vmatpush1.bf16.msra.mxu1 %v4526_v54 }
 0x10d   :  { %831 = vmatprep.subr.bf16.mxu1 %v4534_v56 }
 0x110   :  { %832 = vmatpush1.bf16.msra.mxu1 %v4532_v58 }
 0x111   :  { %833 = vmatprep.subr.bf16.mxu1 %v4540_v60 }
 0x114   :  { %834 = vmatpush1.bf16.msra.mxu1 %v4538_v62 }
 0x115   :  { %835 = vmatprep.subr.bf16.mxu1 %v4546_v0 }
 0x118   :  { %836 = vmatpush2.bf16.msra.mxu1 %v4544_v2 }
 0x119   :  { %837 = vmatprep.subr.bf16.mxu1 %v4552_v4 }
 0x11c   :  { %838 = vmatpush2.bf16.msra.mxu1 %v4550_v6 }
 0x11d   :  { %839 = vmatprep.subr.bf16.mxu1 %v4558_v8 }
 0x120   :  { %840 = vmatpush2.bf16.msra.mxu1 %v4556_v10 }
 0x121   :  { %841 = vmatprep.subr.bf16.mxu1 %v4564_v12 }
 0x124   :  { %842 = vmatpush2.bf16.msra.mxu1 %v4562_v14 }
 0x125   :  { %843 = vmatprep.subr.bf16.mxu1 %v4570_v16  ;;  %v295_v16 = vld [vmem:[#allocation9 + $0x3] sm:$0x3] }
 0x126   :  { %v344_v19 = vrot.slane %v295_v16, %v5102_v33 }
 0x128   :  { %844 = vmatpush2.bf16.msra.mxu1 %v4568_v18 }
 0x129   :  { %845 = vmatprep.subr.bf16.mxu1 %v4576_v22  ;;  %v357_v22 = vrot.slane %v296_v17, %v5102_v33 }
 0x12c   :  { %846 = vmatpush2.bf16.msra.mxu1 %v4574_v21 }
 0x12d   :  { %847 = vmatprep.subr.bf16.mxu1 %v4582_v24  ;;  %v348_v24 = vrot.slane %v295_v16, %v5105_v35 }
 0x130   :  { %848 = vmatpush2.bf16.msra.mxu1 %v4580_v26 }
 0x131   :  { %849 = vmatprep.subr.bf16.mxu1 %v4588_v28  ;;  %v361_v28 = vrot.slane %v296_v17, %v5105_v35 }
 0x134   :  { %850 = vmatpush2.bf16.msra.mxu1 %v4586_v30 }
 0x1b7   :  { %v288_v38 = vpop.f32.mrf.mxu1 }
 0x1b8   :  { %v289_v39 = vadd.f32 %v288_v38, %v167_v36 }
 0x1b9   :  { %v290_v40 = vpop.f32.mrf.mxu1 }
 0x1ba   :  { %v297_v41 = vrot.slane %v289_v39, 4  ;;  %v312_v42 = vmul.f32 %v289_v39, %v289_v39  ;;  %v291_v43 = vadd.f32 %v290_v40, %v171_v37 }
 0x1bb   :  { %v292_v44 = vpop.f32.mrf.mxu1 }
 0x1bc   :  { %v298_v45 = vadd.f32 %v297_v41, %v289_v39  ;;  %v314_v46 = vrot.slane %v312_v42, 4  ;;  %v303_v47 = vrot.slane %v291_v43, 4  ;;  %v313_v48 = vmul.f32 %v291_v43, %v291_v43 }
 0x1bd   :  { %v293_v49 = vpop.f32.mrf.mxu1 }
 0x1be   :  { %v299_v50 = vrot.slane %v298_v45, 2  ;;  %v315_v51 = vadd.f32 %v314_v46, %v312_v42  ;;  %v304_v52 = vadd.f32 %v303_v47, %v291_v43  ;;  %v320_v53 = vrot.slane %v313_v48, 4 }
 0x1c0   :  { %v300_v54 = vadd.f32 %v299_v50, %v298_v45  ;;  %v316_v55 = vrot.slane %v315_v51, 2  ;;  %v305_v56 = vrot.slane %v304_v52, 2  ;;  %v321_v57 = vadd.f32 %v320_v53, %v313_v48 }
 0x1c2   :  { %v301_v58 = vrot.slane %v300_v54, 1  ;;  %v317_v59 = vadd.f32 %v316_v55, %v315_v51  ;;  %v306_v60 = vadd.f32 %v305_v56, %v304_v52  ;;  %v322_v61 = vrot.slane %v321_v57, 2 }
 0x1c4   :  { %v302_v62 = vadd.f32 %v301_v58, %v300_v54  ;;  %v318_v63 = vrot.slane %v317_v59, 1  ;;  %v307_v0 = vrot.slane %v306_v60, 1  ;;  %v323_v1 = vadd.f32 %v322_v61, %v321_v57 }
 0x1c6   :  { %v310_v2 = vmul.f32 0.125, %v302_v62  ;;  %v319_v3 = vadd.f32 %v318_v63, %v317_v59  ;;  %v308_v4 = vadd.f32 %v307_v0, %v306_v60  ;;  %v324_v5 = vrot.slane %v323_v1, 1 }
 0x1c8   :  { %v326_v6 = vmul.f32 0.125, %v319_v3  ;;  %v328_v7 = vmul.f32 %v310_v2, %v310_v2  ;;  %v311_v8 = vmul.f32 0.125, %v308_v4  ;;  %v325_v9 = vadd.f32 %v324_v5, %v323_v1 }
 0x1c9   :  { %v332_v18 = vsub.f32 %v289_v39, %v310_v2 }
 0x1ca   :  { %v330_v10 = vsub.f32 %v326_v6, %v328_v7  ;;  %v329_v11 = vmul.f32 %v311_v8, %v311_v8  ;;  %v327_v12 = vmul.f32 0.125, %v325_v9  ;;  %v333_v23 = vsub.f32 %v291_v43, %v311_v8 }
 0x1cc   :  { %v334_v13 = vadd.f32 0.8, %v330_v10  ;;  %v331_v14 = vsub.f32 %v327_v12, %v329_v11 }
 0x1ce   :  { %4589 = vrsqrt.f32 %v334_v13  ;;  %v335_v15 = vadd.f32 0.8, %v331_v14 }
 0x1d0   :  { %4591 = vrsqrt.f32 %v335_v15 }
 0x1db   :  { %v4590_v20 = vpop.eup %4589 }
 0x1dc   :  { %v338_v21 = vmul.f32 %v4590_v20, %v332_v18 }
 0x1dd   :  { %v4592_v25 = vpop.eup %4591 }
 0x1de   :  { %v351_v26 = vmul.f32 %v344_v19, %v338_v21  ;;  %v339_v27 = vmul.f32 %v4592_v25, %v333_v23 }
 0x1e0   :  { %v364_v29 = vadd.f32 %v357_v22, %v351_v26  ;;  %v352_v30 = vmul.f32 %v348_v24, %v339_v27 }
 0x1e2   :  { %v366_v34 = vmul.f32 0.2, %v364_v29  ;;  %v365_v36 = vadd.f32 %v361_v28, %v352_v30 }
 0x1e4   :  { %v367_v37 = vmul.f32 0.2, %v365_v36  ;;  %v368_v38 = vmax.f32 %v364_v29, %v366_v34 }
 0x1e6   :  { %v369_v39 = vmax.f32 %v365_v36, %v367_v37  ;;  %v435_v41 = vpack.c.bf16 %v368_v38, %v368_v38 }
 0x1e8   :  { %v436_v40 = vpack.c.bf16 %v369_v39, %v369_v39 }
 0x1ea   :  { %810 = vmatprep.mubr.bf16.mxu0 %v436_v40  ;;  %851 = vmatprep.mubr.bf16.mxu1 %v436_v40 }
 0x1eb   :  { %811 = vmatmul.mubr.bf16.vlgmr.msra.gmra.mxu0 %v435_v41  ;;  %852 = vmatmul.mubr.bf16.vlgmr.msra.gmra.mxu1 %v435_v41 }
 0x1ec   :  { %4766 = shalt.err (!%p4763_p5)  }
 0x1ed   :  { %73 = dma.hbm_to_vmem [thread:$0]  %s5503_s4, 32768, %s71_s16, [#allocation3]  ;;  %v5117_v42 = vsub.s32 2, %v5099_v32  ;;  %v434_v43 = vld [vmem:[#allocation9 + $0x7] sm:$0xf]  ;;  %v5120_v44 = vsub.s32 3, %v5099_v32 }
 0x1ee   :  { %v441_v45 = vrot.slane %v434_v43, %v5102_v33  ;;  %v445_v49 = vrot.slane %v434_v43, %v5105_v35 }
 0x1ef   :  { %v449_v46 = vrot.slane %v434_v43, %v5117_v42  ;;  %v453_v50 = vrot.slane %v434_v43, %v5120_v44 }
 0x2ab   :  { %v812_v47 = vpop.f32.mrf.mxu0  ;;  %v853_v48 = vpop.f32.mrf.mxu1 }
 0x2ac   :  { %v5126_v51 = vadd.f32 %v812_v47, %v441_v45  ;;  %v5128_v52 = vadd.f32 %v853_v48, %v449_v46 }
 0x2ad   :  { %v814_v53 = vpop.f32.mrf.mxu0  ;;  %v855_v54 = vpop.f32.mrf.mxu1 }
 0x2ae   :  { %v862_v55 = vrot.slane %v5126_v51, 4  ;;  %v890_v56 = vmul.f32 %v5126_v51, %v5126_v51  ;;  %v874_v57 = vrot.slane %v5128_v52, 4  ;;  %v892_v58 = vmul.f32 %v5128_v52, %v5128_v52 }
 0x2af   :  { %v5136_v59 = vadd.f32 %v814_v53, %v445_v49  ;;  %v5138_v60 = vadd.f32 %v855_v54, %v453_v50  ;;  %v816_v61 = vpop.f32.mrf.mxu0  ;;  %v857_v62 = vpop.f32.mrf.mxu1 }
 0x2b0   :  { %v863_v63 = vadd.f32 %v862_v55, %v5126_v51  ;;  %v894_v0 = vrot.slane %v890_v56, 4  ;;  %v875_v1 = vadd.f32 %v874_v57, %v5128_v52  ;;  %v906_v2 = vrot.slane %v892_v58, 4 }
 0x2b1   :  { %v868_v3 = vrot.slane %v5136_v59, 4  ;;  %v891_v4 = vmul.f32 %v5136_v59, %v5136_v59  ;;  %v880_v5 = vrot.slane %v5138_v60, 4  ;;  %v893_v6 = vmul.f32 %v5138_v60, %v5138_v60  ;;  %v817_v7 = vpop.f32.mrf.mxu0  ;;  %v858_v8 = vpop.f32.mrf.mxu1 }
 0x2b2   :  { %v864_v9 = vrot.slane %v863_v63, 2  ;;  %v895_v10 = vadd.f32 %v894_v0, %v890_v56  ;;  %v876_v11 = vrot.slane %v875_v1, 2  ;;  %v907_v12 = vadd.f32 %v906_v2, %v892_v58 }
 0x2b3   :  { %v869_v13 = vadd.f32 %v868_v3, %v5136_v59  ;;  %v900_v14 = vrot.slane %v891_v4, 4  ;;  %v881_v15 = vadd.f32 %v880_v5, %v5138_v60  ;;  %v912_v16 = vrot.slane %v893_v6, 4 }
 0x2b4   :  { %v865_v17 = vadd.f32 %v864_v9, %v863_v63  ;;  %v896_v18 = vrot.slane %v895_v10, 2  ;;  %v877_v19 = vadd.f32 %v876_v11, %v875_v1  ;;  %v908_v20 = vrot.slane %v907_v12, 2 }
 0x2b5   :  { %v870_v21 = vrot.slane %v869_v13, 2  ;;  %v901_v22 = vadd.f32 %v900_v14, %v891_v4  ;;  %v882_v23 = vrot.slane %v881_v15, 2  ;;  %v913_v24 = vadd.f32 %v912_v16, %v893_v6  ;;  %v861_v16 = vld [vmem:[#allocation9 + $0xf] sm:$0xf] }
 0x2b6   :  { %v866_v25 = vrot.slane %v865_v17, 1  ;;  %v897_v26 = vadd.f32 %v896_v18, %v895_v10  ;;  %v878_v27 = vrot.slane %v877_v19, 1  ;;  %v909_v28 = vadd.f32 %v908_v20, %v907_v12 }
 0x2b7   :  { %v871_v29 = vadd.f32 %v870_v21, %v869_v13  ;;  %v902_v30 = vrot.slane %v901_v22, 2  ;;  %v883_v34 = vadd.f32 %v882_v23, %v881_v15  ;;  %v914_v36 = vrot.slane %v913_v24, 2  ;;  %v860_v15 = vld [vmem:[#allocation9 + $0xb] sm:$0xf] }
 0x2b8   :  { %v867_v37 = vadd.f32 %v866_v25, %v865_v17  ;;  %v898_v38 = vrot.slane %v897_v26, 1  ;;  %v879_v39 = vadd.f32 %v878_v27, %v877_v19  ;;  %v910_v40 = vrot.slane %v909_v28, 1 }
 0x2b9   :  { %v872_v41 = vrot.slane %v871_v29, 1  ;;  %v903_v43 = vadd.f32 %v902_v30, %v901_v22  ;;  %v884_v45 = vrot.slane %v883_v34, 1  ;;  %v915_v46 = vadd.f32 %v914_v36, %v913_v24 }
 0x2ba   :  { %v886_v47 = vmul.f32 0.125, %v867_v37  ;;  %v899_v48 = vadd.f32 %v898_v38, %v897_v26  ;;  %v888_v49 = vmul.f32 0.125, %v879_v39  ;;  %v911_v50 = vadd.f32 %v910_v40, %v909_v28 }
 0x2bb   :  { %v873_v53 = vadd.f32 %v872_v41, %v871_v29  ;;  %v904_v54 = vrot.slane %v903_v43, 1  ;;  %v885_v55 = vadd.f32 %v884_v45, %v883_v34  ;;  %v916_v56 = vrot.slane %v915_v46, 1 }
 0x2bc   :  { %v918_v57 = vmul.f32 0.125, %v899_v48  ;;  %v922_v58 = vmul.f32 %v886_v47, %v886_v47  ;;  %v920_v61 = vmul.f32 0.125, %v911_v50  ;;  %v924_v62 = vmul.f32 %v888_v49, %v888_v49 }
 0x2bd   :  { %v887_v63 = vmul.f32 0.125, %v873_v53  ;;  %v905_v0 = vadd.f32 %v904_v54, %v903_v43  ;;  %v889_v2 = vmul.f32 0.125, %v885_v55  ;;  %v917_v3 = vadd.f32 %v916_v56, %v915_v46 }
 0x2be   :  { %v926_v1 = vsub.f32 %v918_v57, %v922_v58  ;;  %v928_v4 = vsub.f32 %v920_v61, %v924_v62  ;;  %v930_v17 = vsub.f32 %v5126_v51, %v886_v47  ;;  %v950_v18 = vrot.slane %v860_v15, %v5102_v33 }
 0x2bf   :  { %v919_v5 = vmul.f32 0.125, %v905_v0  ;;  %v923_v6 = vmul.f32 %v887_v63, %v887_v63  ;;  %v921_v8 = vmul.f32 0.125, %v917_v3  ;;  %v925_v9 = vmul.f32 %v889_v2, %v889_v2 }
 0x2c0   :  { %v934_v7 = vadd.f32 0.8, %v926_v1  ;;  %v936_v10 = vadd.f32 0.8, %v928_v4  ;;  %v932_v20 = vsub.f32 %v5128_v52, %v888_v49  ;;  %v958_v21 = vrot.slane %v860_v15, %v5117_v42 }
 0x2c1   :  { %v927_v11 = vsub.f32 %v919_v5, %v923_v6  ;;  %v929_v12 = vsub.f32 %v921_v8, %v925_v9  ;;  %v975_v24 = vrot.slane %v861_v16, %v5102_v33  ;;  %v983_v26 = vrot.slane %v861_v16, %v5117_v42 }
 0x2c2   :  { %4593 = vrsqrt.f32 %v934_v7  ;;  %v931_v27 = vsub.f32 %v5136_v59, %v887_v63  ;;  %v954_v28 = vrot.slane %v860_v15, %v5105_v35  ;;  %v933_v30 = vsub.f32 %v5138_v60, %v889_v2 }
 0x2c3   :  { %4595 = vrsqrt.f32 %v936_v10  ;;  %v935_v13 = vadd.f32 0.8, %v927_v11  ;;  %v937_v14 = vadd.f32 0.8, %v929_v12  ;;  %v962_v34 = vrot.slane %v860_v15, %v5120_v44 }
 0x2c4   :  { %v979_v38 = vrot.slane %v861_v16, %v5105_v35  ;;  %v987_v41 = vrot.slane %v861_v16, %v5120_v44 }
 0x2c5   :  { %4597 = vrsqrt.f32 %v935_v13 }
 0x2c6   :  { %4599 = vrsqrt.f32 %v937_v14 }
 0x2cf   :  { %v4594_v19 = vpop.eup %4593 }
 0x2d0   :  { %v4596_v22 = vpop.eup %4595  ;;  %v942_v23 = vmul.f32 %v4594_v19, %v930_v17 }
 0x2d1   :  { %v944_v25 = vmul.f32 %v4596_v22, %v932_v20 }
 0x2d2   :  { %v4598_v29 = vpop.eup %4597  ;;  %v967_v51 = vmul.f32 %v950_v18, %v942_v23 }
 0x2d3   :  { %v4600_v52 = vpop.eup %4599  ;;  %v969_v36 = vmul.f32 %v958_v21, %v944_v25  ;;  %v943_v37 = vmul.f32 %v4598_v29, %v931_v27 }
 0x2d4   :  { %v992_v39 = vadd.f32 %v975_v24, %v967_v51  ;;  %v945_v40 = vmul.f32 %v4600_v52, %v933_v30 }
 0x2d5   :  { %v994_v43 = vadd.f32 %v983_v26, %v969_v36  ;;  %v968_v45 = vmul.f32 %v954_v28, %v943_v37 }
 0x2d6   :  { %v996_v59 = vmul.f32 0.2, %v992_v39  ;;  %v970_v46 = vmul.f32 %v962_v34, %v945_v40 }
 0x2d7   :  { %v998_v47 = vmul.f32 0.2, %v994_v43  ;;  %v993_v48 = vadd.f32 %v979_v38, %v968_v45 }
 0x2d8   :  { %v5162_v49 = vmax.f32 %v992_v39, %v996_v59  ;;  %v995_v60 = vadd.f32 %v987_v41, %v970_v46 }
 0x2d9   :  { %v5164_v50 = vmax.f32 %v994_v43, %v998_v47  ;;  %v997_v53 = vmul.f32 0.2, %v993_v48 }
 0x2da   :  { %v999_v54 = vmul.f32 0.2, %v995_v60 }
 0x2db   :  { %v1001_v55 = vmax.f32 %v993_v48, %v997_v53 }
 0x2dc   :  { %v1003_v56 = vmax.f32 %v995_v60, %v999_v54 }
 0x2dd   :  { %4791 = dma.done.wait [#allocation3], 32768 }
 0x2de   :  { %4792 = vsyncadd [#allocation3], 4294934528  ;;  %v5166_v57 = vpack.c.bf16 %v1001_v55, %v1001_v55  ;;  %v5168_v58 = vpack.c.bf16 %v1003_v56, %v1003_v56  ;;  %v1064_v61 = vld [vmem:[#allocation2 + $0x1c0] sm:$0xff]  ;;  %vm3890_vm2 = vcmask 1047808   ;;  %s4805_s2 = smov 127   ;;  %s4806_s29 = smov 97  }
 0x2df   :  { %v1068_v62 = vld [vmem:[#allocation2 + $0x1e0] sm:$0xff]  ;;  %s4807_s30 = smov [#allocation10]  }
 0x2e0   :  { %2622 = vmatprep.mubr.bf16.mxu0 %v5166_v57  ;;  %2663 = vmatprep.mubr.bf16.mxu1 %v5168_v58  ;;  %v1192_v63 = vld [vmem:[#allocation2 + $0x5c0] sm:$0xff]  ;;  %v4090_v0 = vcombine.high %v1064_v61, %v1068_v62  ;;  %v4089_v2 = vcombine.low %v1064_v61, %v1068_v62  ;;  %s3933_s8 = sshll.u32 %s4807_s30, 4  ;;  %s3934_s8 = int_to_ptr.vmem [resolvable:$true] %s3933_s8 }
 0x2e1   :  { %v1196_v1 = vld [vmem:[#allocation2 + $0x5e0] sm:$0xff]  ;;  %s4767_s9 = scalar_lea.vmem %s3934_s8, 128  ;;  %p4772_p7 = scmp.lt.s32.totalorder %s3934_s8, %s3934_s8 }
 0x2e2   :  { %v1056_v3 = vld [vmem:[#allocation2 + $0x180] sm:$0xff]  ;;  %v4218_v5 = vcombine.high %v1192_v63, %v1196_v1  ;;  %v4217_v6 = vcombine.low %v1192_v63, %v1196_v1  ;;  %2590 = vmatprep.subr.bf16.mxu0 %v4090_v0  ;;  %p4768_p6 = scmp.ne.s32.totalorder %s3934_s8, %s4767_s9  ;;  %p4773_p8 = scmp.lt.s32.totalorder %s4767_s9, %s4767_s9 }
 0x2e3   :  { %v1060_v4 = vld [vmem:[#allocation2 + $0x1a0] sm:$0xff]  ;;  %2591 = vmatpush1.bf16.msra.mxu0 %v4089_v2 }
 0x2e4   :  { %v4082_v7 = vcombine.high %v1056_v3, %v1060_v4  ;;  %v1184_v8 = vld [vmem:[#allocation2 + $0x580] sm:$0xff]  ;;  %2631 = vmatprep.subr.bf16.mxu1 %v4218_v5  ;;  %v4081_v15 = vcombine.low %v1056_v3, %v1060_v4  ;;  %p4774_p9 = por %p4773_p8, %p4772_p7 }
 0x2e5   :  { %v1188_v9 = vld [vmem:[#allocation2 + $0x5a0] sm:$0xff]  ;;  %2632 = vmatpush1.bf16.msra.mxu1 %v4217_v6 }
 0x2e6   :  { %v1048_v10 = vld [vmem:[#allocation2 + $0x140] sm:$0xff]  ;;  %v4210_v11 = vcombine.high %v1184_v8, %v1188_v9  ;;  %2592 = vmatprep.subr.bf16.mxu0 %v4082_v7  ;;  %v4209_v16 = vcombine.low %v1184_v8, %v1188_v9  ;;  %p4775_p10 = pnand %p4774_p9, %p4768_p6 }
 0x2e7   :  { %v1052_v12 = vld [vmem:[#allocation2 + $0x160] sm:$0xff]  ;;  %2593 = vmatpush1.bf16.msra.mxu0 %v4081_v15 }
 0x2e8   :  { %v1176_v13 = vld [vmem:[#allocation2 + $0x540] sm:$0xff]  ;;  %v4074_v17 = vcombine.high %v1048_v10, %v1052_v12  ;;  %2633 = vmatprep.subr.bf16.mxu1 %v4210_v11  ;;  %v4073_v23 = vcombine.low %v1048_v10, %v1052_v12 }
 0x2e9   :  { %v1180_v14 = vld [vmem:[#allocation2 + $0x560] sm:$0xff]  ;;  %2634 = vmatpush1.bf16.msra.mxu1 %v4209_v16 }
 0x2ea   :  { %v4202_v18 = vcombine.high %v1176_v13, %v1180_v14  ;;  %v1040_v19 = vld [vmem:[#allocation2 + $0x100] sm:$0xff]  ;;  %2594 = vmatprep.subr.bf16.mxu0 %v4074_v17  ;;  %v4201_v24 = vcombine.low %v1176_v13, %v1180_v14 }
 0x2eb   :  { %v1044_v20 = vld [vmem:[#allocation2 + $0x120] sm:$0xff]  ;;  %2595 = vmatpush1.bf16.msra.mxu0 %v4073_v23 }
 0x2ec   :  { %v1168_v21 = vld [vmem:[#allocation2 + $0x500] sm:$0xff]  ;;  %v4066_v25 = vcombine.high %v1040_v19, %v1044_v20  ;;  %2635 = vmatprep.subr.bf16.mxu1 %v4202_v18  ;;  %v4065_v30 = vcombine.low %v1040_v19, %v1044_v20 }
 0x2ed   :  { %v1172_v22 = vld [vmem:[#allocation2 + $0x520] sm:$0xff]  ;;  %2636 = vmatpush1.bf16.msra.mxu1 %v4201_v24 }
 0x2ee   :  { %v4194_v26 = vcombine.high %v1168_v21, %v1172_v22  ;;  %v1032_v27 = vld [vmem:[#allocation2 + $0xc0] sm:$0xff]  ;;  %2596 = vmatprep.subr.bf16.mxu0 %v4066_v25  ;;  %v4193_v34 = vcombine.low %v1168_v21, %v1172_v22 }
 0x2ef   :  { %v1036_v28 = vld [vmem:[#allocation2 + $0xe0] sm:$0xff]  ;;  %2597 = vmatpush1.bf16.msra.mxu0 %v4065_v30 }
 0x2f0   :  { %v1160_v29 = vld [vmem:[#allocation2 + $0x4c0] sm:$0xff]  ;;  %v4058_v52 = vcombine.high %v1032_v27, %v1036_v28  ;;  %2637 = vmatprep.subr.bf16.mxu1 %v4194_v26  ;;  %v4057_v41 = vcombine.low %v1032_v27, %v1036_v28 }
 0x2f1   :  { %v1164_v51 = vld [vmem:[#allocation2 + $0x4e0] sm:$0xff]  ;;  %2638 = vmatpush1.bf16.msra.mxu1 %v4193_v34 }
 0x2f2   :  { %v4186_v36 = vcombine.high %v1160_v29, %v1164_v51  ;;  %v1024_v37 = vld [vmem:[#allocation2 + $0x80] sm:$0xff]  ;;  %2598 = vmatprep.subr.bf16.mxu0 %v4058_v52  ;;  %v4185_v43 = vcombine.low %v1160_v29, %v1164_v51 }
 0x2f3   :  { %v1028_v38 = vld [vmem:[#allocation2 + $0xa0] sm:$0xff]  ;;  %2599 = vmatpush1.bf16.msra.mxu0 %v4057_v41 }
 0x2f4   :  { %v1152_v39 = vld [vmem:[#allocation2 + $0x480] sm:$0xff]  ;;  %v4050_v45 = vcombine.high %v1024_v37, %v1028_v38  ;;  %2639 = vmatprep.subr.bf16.mxu1 %v4186_v36  ;;  %v4049_v53 = vcombine.low %v1024_v37, %v1028_v38 }
 0x2f5   :  { %v1156_v40 = vld [vmem:[#allocation2 + $0x4a0] sm:$0xff]  ;;  %2640 = vmatpush1.bf16.msra.mxu1 %v4185_v43 }
 0x2f6   :  { %v4178_v59 = vcombine.high %v1152_v39, %v1156_v40  ;;  %v1016_v46 = vld [vmem:[#allocation2 + $0x40] sm:$0xff]  ;;  %2600 = vmatprep.subr.bf16.mxu0 %v4050_v45  ;;  %v4177_v54 = vcombine.low %v1152_v39, %v1156_v40 }
 0x2f7   :  { %v1020_v47 = vld [vmem:[#allocation2 + $0x60] sm:$0xff]  ;;  %2601 = vmatpush1.bf16.msra.mxu0 %v4049_v53 }
 0x2f8   :  { %v1144_v48 = vld [vmem:[#allocation2 + $0x440] sm:$0xff]  ;;  %v4042_v55 = vcombine.high %v1016_v46, %v1020_v47  ;;  %2641 = vmatprep.subr.bf16.mxu1 %v4178_v59  ;;  %v4041_v1 = vcombine.low %v1016_v46, %v1020_v47 }
 0x2f9   :  { %v1148_v60 = vld [vmem:[#allocation2 + $0x460] sm:$0xff]  ;;  %2642 = vmatpush1.bf16.msra.mxu1 %v4177_v54 }
 0x2fa   :  { %v4170_v56 = vcombine.high %v1144_v48, %v1148_v60  ;;  %v1008_v61 = vld [vmem:[#allocation2] sm:$0xff]  ;;  %2602 = vmatprep.subr.bf16.mxu0 %v4042_v55  ;;  %v4169_v2 = vcombine.low %v1144_v48, %v1148_v60 }
 0x2fb   :  { %v1012_v62 = vld [vmem:[#allocation2 + $0x20] sm:$0xff]  ;;  %2603 = vmatpush1.bf16.msra.mxu0 %v4041_v1 }
 0x2fc   :  { %v1136_v63 = vld [vmem:[#allocation2 + $0x400] sm:$0xff]  ;;  %v4034_v3 = vcombine.high %v1008_v61, %v1012_v62  ;;  %2643 = vmatprep.subr.bf16.mxu1 %v4170_v56  ;;  %v4033_v9 = vcombine.low %v1008_v61, %v1012_v62 }
 0x2fd   :  { %v1140_v0 = vld [vmem:[#allocation2 + $0x420] sm:$0xff]  ;;  %2644 = vmatpush1.bf16.msra.mxu1 %v4169_v2 }
 0x2fe   :  { %v4162_v4 = vcombine.high %v1136_v63, %v1140_v0  ;;  %v1128_v5 = vld [vmem:[#allocation2 + $0x3c0] sm:$0xff]  ;;  %2604 = vmatprep.subr.bf16.mxu0 %v4034_v3  ;;  %v4161_v10 = vcombine.low %v1136_v63, %v1140_v0 }
 0x2ff   :  { %v1132_v6 = vld [vmem:[#allocation2 + $0x3e0] sm:$0xff]  ;;  %2605 = vmatpush1.bf16.msra.mxu0 %v4033_v9 }
 0x300   :  { %v1256_v7 = vld [vmem:[#allocation2 + $0x7c0] sm:$0xff]  ;;  %v4154_v11 = vcombine.high %v1128_v5, %v1132_v6  ;;  %2645 = vmatprep.subr.bf16.mxu1 %v4162_v4  ;;  %v4153_v17 = vcombine.low %v1128_v5, %v1132_v6 }
 0x301   :  { %v1260_v8 = vld [vmem:[#allocation2 + $0x7e0] sm:$0xff]  ;;  %2646 = vmatpush1.bf16.msra.mxu1 %v4161_v10 }
 0x302   :  { %v4282_v12 = vcombine.high %v1256_v7, %v1260_v8  ;;  %v1120_v13 = vld [vmem:[#allocation2 + $0x380] sm:$0xff]  ;;  %2606 = vmatprep.subr.bf16.mxu0 %v4154_v11  ;;  %v4281_v18 = vcombine.low %v1256_v7, %v1260_v8 }
 0x303   :  { %v1124_v14 = vld [vmem:[#allocation2 + $0x3a0] sm:$0xff]  ;;  %2607 = vmatpush2.bf16.msra.mxu0 %v4153_v17  ;;  %v1193_v17 = vld [vmem:[#allocation2 + $0x5c8] sm:$0xff] }
 0x304   :  { %v1248_v15 = vld [vmem:[#allocation2 + $0x780] sm:$0xff]  ;;  %v4146_v19 = vcombine.high %v1120_v13, %v1124_v14  ;;  %2647 = vmatprep.subr.bf16.mxu1 %v4282_v12  ;;  %v4145_v25 = vcombine.low %v1120_v13, %v1124_v14 }
 0x305   :  { %v1252_v16 = vld [vmem:[#allocation2 + $0x7a0] sm:$0xff]  ;;  %2648 = vmatpush2.bf16.msra.mxu1 %v4281_v18  ;;  %v1197_v18 = vld [vmem:[#allocation2 + $0x5e8] sm:$0xff] }
 0x306   :  { %v4274_v20 = vcombine.high %v1248_v15, %v1252_v16  ;;  %v1112_v21 = vld [vmem:[#allocation2 + $0x340] sm:$0xff]  ;;  %2608 = vmatprep.subr.bf16.mxu0 %v4146_v19  ;;  %v4273_v26 = vcombine.low %v1248_v15, %v1252_v16  ;;  %v1065_v15 = vld [vmem:[#allocation2 + $0x1c8] sm:$0xff] }
 0x307   :  { %v1116_v22 = vld [vmem:[#allocation2 + $0x360] sm:$0xff]  ;;  %2609 = vmatpush2.bf16.msra.mxu0 %v4145_v25  ;;  %v1069_v16 = vld [vmem:[#allocation2 + $0x1e8] sm:$0xff]  ;;  %v5174_v25 = vpack.c.bf16 %v5162_v49, %v5162_v49 }
 0x308   :  { %v1240_v23 = vld [vmem:[#allocation2 + $0x740] sm:$0xff]  ;;  %v4138_v27 = vcombine.high %v1112_v21, %v1116_v22  ;;  %2649 = vmatprep.subr.bf16.mxu1 %v4274_v20  ;;  %v4137_v52 = vcombine.low %v1112_v21, %v1116_v22  ;;  %v4092_v21 = vcombine.high %v1065_v15, %v1069_v16  ;;  %v4220_v22 = vcombine.high %v1193_v17, %v1197_v18 }
 0x309   :  { %v1244_v24 = vld [vmem:[#allocation2 + $0x760] sm:$0xff]  ;;  %2650 = vmatpush2.bf16.msra.mxu1 %v4273_v26  ;;  %v1185_v26 = vld [vmem:[#allocation2 + $0x588] sm:$0xff] }
 0x30a   :  { %v4266_v28 = vcombine.high %v1240_v23, %v1244_v24  ;;  %v1104_v29 = vld [vmem:[#allocation2 + $0x300] sm:$0xff]  ;;  %2610 = vmatprep.subr.bf16.mxu0 %v4138_v27  ;;  %v4265_v36 = vcombine.low %v1240_v23, %v1244_v24  ;;  %v1057_v23 = vld [vmem:[#allocation2 + $0x188] sm:$0xff] }
 0x30b   :  { %v1108_v51 = vld [vmem:[#allocation2 + $0x320] sm:$0xff]  ;;  %2611 = vmatpush2.bf16.msra.mxu0 %v4137_v52  ;;  %v1061_v24 = vld [vmem:[#allocation2 + $0x1a8] sm:$0xff] }
 0x30c   :  { %v1232_v30 = vld [vmem:[#allocation2 + $0x700] sm:$0xff]  ;;  %v4130_v37 = vcombine.high %v1104_v29, %v1108_v51  ;;  %2651 = vmatprep.subr.bf16.mxu1 %v4266_v28  ;;  %v4129_v45 = vcombine.low %v1104_v29, %v1108_v51  ;;  %v1189_v27 = vld [vmem:[#allocation2 + $0x5a8] sm:$0xff]  ;;  %v5178_v28 = vpack.c.bf16 %v5164_v50, %v5164_v50  ;;  %v4091_v29 = vcombine.low %v1065_v15, %v1069_v16 }
 0x30d   :  { %v1236_v34 = vld [vmem:[#allocation2 + $0x720] sm:$0xff]  ;;  %2652 = vmatpush2.bf16.msra.mxu1 %v4265_v36  ;;  %v4219_v51 = vcombine.low %v1193_v17, %v1197_v18  ;;  %v1053_v52 = vld [vmem:[#allocation2 + $0x168] sm:$0xff]  ;;  %v4083_v49 = vcombine.low %v1057_v23, %v1061_v24  ;;  %v4211_v50 = vcombine.low %v1185_v26, %v1189_v27 }
 0x30e   :  { %v4258_v38 = vcombine.high %v1232_v30, %v1236_v34  ;;  %v1096_v39 = vld [vmem:[#allocation2 + $0x2c0] sm:$0xff]  ;;  %2612 = vmatprep.subr.bf16.mxu0 %v4130_v37  ;;  %v4257_v59 = vcombine.low %v1232_v30, %v1236_v34  ;;  %v4084_v30 = vcombine.high %v1057_v23, %v1061_v24  ;;  %v1049_v34 = vld [vmem:[#allocation2 + $0x148] sm:$0xff]  ;;  %v4212_v37 = vcombine.high %v1185_v26, %v1189_v27 }
 0x30f   :  { %v1100_v40 = vld [vmem:[#allocation2 + $0x2e0] sm:$0xff]  ;;  %2613 = vmatpush2.bf16.msra.mxu0 %v4129_v45  ;;  %v1177_v36 = vld [vmem:[#allocation2 + $0x548] sm:$0xff] }
 0x310   :  { %v1224_v41 = vld [vmem:[#allocation2 + $0x6c0] sm:$0xff]  ;;  %v4122_v46 = vcombine.high %v1096_v39, %v1100_v40  ;;  %2653 = vmatprep.subr.bf16.mxu1 %v4258_v38  ;;  %v4121_v55 = vcombine.low %v1096_v39, %v1100_v40  ;;  %v1181_v38 = vld [vmem:[#allocation2 + $0x568] sm:$0xff]  ;;  %v4076_v39 = vcombine.high %v1049_v34, %v1053_v52 }
 0x311   :  { %v1228_v43 = vld [vmem:[#allocation2 + $0x6e0] sm:$0xff]  ;;  %2654 = vmatpush2.bf16.msra.mxu1 %v4257_v59  ;;  %v1041_v40 = vld [vmem:[#allocation2 + $0x108] sm:$0xff]  ;;  %v4204_v45 = vcombine.high %v1177_v36, %v1181_v38 }
 0x312   :  { %v4250_v47 = vcombine.high %v1224_v41, %v1228_v43  ;;  %v1088_v48 = vld [vmem:[#allocation2 + $0x280] sm:$0xff]  ;;  %2614 = vmatprep.subr.bf16.mxu0 %v4122_v46  ;;  %v4249_v56 = vcombine.low %v1224_v41, %v1228_v43  ;;  %v1045_v41 = vld [vmem:[#allocation2 + $0x128] sm:$0xff]  ;;  %v4075_v46 = vcombine.low %v1049_v34, %v1053_v52 }
 0x313   :  { %v1092_v60 = vld [vmem:[#allocation2 + $0x2a0] sm:$0xff]  ;;  %2615 = vmatpush2.bf16.msra.mxu0 %v4121_v55  ;;  %v1169_v43 = vld [vmem:[#allocation2 + $0x508] sm:$0xff] }
 0x314   :  { %v1216_v53 = vld [vmem:[#allocation2 + $0x680] sm:$0xff]  ;;  %v4114_v61 = vcombine.high %v1088_v48, %v1092_v60  ;;  %2655 = vmatprep.subr.bf16.mxu1 %v4250_v47  ;;  %v4113_v3 = vcombine.low %v1088_v48, %v1092_v60  ;;  %v1173_v59 = vld [vmem:[#allocation2 + $0x528] sm:$0xff]  ;;  %v4203_v47 = vcombine.low %v1177_v36, %v1181_v38  ;;  %v4068_v48 = vcombine.high %v1041_v40, %v1045_v41 }
 0x315   :  { %v1220_v54 = vld [vmem:[#allocation2 + $0x6a0] sm:$0xff]  ;;  %2656 = vmatpush2.bf16.msra.mxu1 %v4249_v56  ;;  %v1033_v60 = vld [vmem:[#allocation2 + $0xc8] sm:$0xff]  ;;  %v4196_v55 = vcombine.high %v1169_v43, %v1173_v59 }
 0x316   :  { %v4242_v62 = vcombine.high %v1216_v53, %v1220_v54  ;;  %v1080_v63 = vld [vmem:[#allocation2 + $0x240] sm:$0xff]  ;;  %2616 = vmatprep.subr.bf16.mxu0 %v4114_v61  ;;  %v4241_v4 = vcombine.low %v1216_v53, %v1220_v54  ;;  %v1037_v53 = vld [vmem:[#allocation2 + $0xe8] sm:$0xff]  ;;  %v4067_v61 = vcombine.low %v1041_v40, %v1045_v41 }
 0x317   :  { %v1084_v0 = vld [vmem:[#allocation2 + $0x260] sm:$0xff]  ;;  %2617 = vmatpush2.bf16.msra.mxu0 %v4113_v3  ;;  %v1161_v54 = vld [vmem:[#allocation2 + $0x4c8] sm:$0xff] }
 0x318   :  { %v1208_v1 = vld [vmem:[#allocation2 + $0x640] sm:$0xff]  ;;  %v4106_v5 = vcombine.high %v1080_v63, %v1084_v0  ;;  %2657 = vmatprep.subr.bf16.mxu1 %v4242_v62  ;;  %v4105_v11 = vcombine.low %v1080_v63, %v1084_v0  ;;  %v1165_v56 = vld [vmem:[#allocation2 + $0x4e8] sm:$0xff]  ;;  %v4195_v62 = vcombine.low %v1169_v43, %v1173_v59  ;;  %v4060_v63 = vcombine.high %v1033_v60, %v1037_v53 }
 0x319   :  { %v1212_v2 = vld [vmem:[#allocation2 + $0x660] sm:$0xff]  ;;  %2658 = vmatpush2.bf16.msra.mxu1 %v4241_v4  ;;  %v1025_v0 = vld [vmem:[#allocation2 + $0x88] sm:$0xff]  ;;  %v4188_v3 = vcombine.high %v1161_v54, %v1165_v56 }
 0x31a   :  { %v4234_v6 = vcombine.high %v1208_v1, %v1212_v2  ;;  %v1072_v7 = vld [vmem:[#allocation2 + $0x200] sm:$0xff]  ;;  %2618 = vmatprep.subr.bf16.mxu0 %v4106_v5  ;;  %v4233_v12 = vcombine.low %v1208_v1, %v1212_v2  ;;  %v1029_v1 = vld [vmem:[#allocation2 + $0xa8] sm:$0xff]  ;;  %v4059_v5 = vcombine.low %v1033_v60, %v1037_v53 }
 0x31b   :  { %v1076_v8 = vld [vmem:[#allocation2 + $0x220] sm:$0xff]  ;;  %2619 = vmatpush2.bf16.msra.mxu0 %v4105_v11  ;;  %v1153_v2 = vld [vmem:[#allocation2 + $0x488] sm:$0xff] }
 0x31c   :  { %v1200_v9 = vld [vmem:[#allocation2 + $0x600] sm:$0xff]  ;;  %v4098_v13 = vcombine.high %v1072_v7, %v1076_v8  ;;  %2659 = vmatprep.subr.bf16.mxu1 %v4234_v6  ;;  %v4097_v19 = vcombine.low %v1072_v7, %v1076_v8  ;;  %v1157_v4 = vld [vmem:[#allocation2 + $0x4a8] sm:$0xff]  ;;  %v4187_v6 = vcombine.low %v1161_v54, %v1165_v56  ;;  %v4052_v7 = vcombine.high %v1025_v0, %v1029_v1 }
 0x31d   :  { %v1204_v10 = vld [vmem:[#allocation2 + $0x620] sm:$0xff]  ;;  %2660 = vmatpush2.bf16.msra.mxu1 %v4233_v12  ;;  %v1017_v8 = vld [vmem:[#allocation2 + $0x48] sm:$0xff]  ;;  %v4180_v11 = vcombine.high %v1153_v2, %v1157_v4 }
 0x31e   :  { %v4226_v14 = vcombine.high %v1200_v9, %v1204_v10  ;;  %2620 = vmatprep.subr.bf16.mxu0 %v4098_v13  ;;  %v4225_v20 = vcombine.low %v1200_v9, %v1204_v10  ;;  %v1021_v9 = vld [vmem:[#allocation2 + $0x68] sm:$0xff]  ;;  %v4051_v13 = vcombine.low %v1025_v0, %v1029_v1 }
 0x31f   :  { %2621 = vmatpush2.bf16.msra.mxu0 %v4097_v19  ;;  %v1145_v10 = vld [vmem:[#allocation2 + $0x448] sm:$0xff]  ;;  %v4044_v15 = vcombine.high %v1017_v8, %v1021_v9 }
 0x320   :  { %2661 = vmatprep.subr.bf16.mxu1 %v4226_v14  ;;  %2672 = vmatprep.subr.bf16.mxu0 %v4092_v21  ;;  %v1149_v12 = vld [vmem:[#allocation2 + $0x468] sm:$0xff]  ;;  %v4179_v14 = vcombine.low %v1153_v2, %v1157_v4  ;;  %v4043_v21 = vcombine.low %v1017_v8, %v1021_v9 }
 0x321   :  { %2662 = vmatpush2.bf16.msra.mxu1 %v4225_v20  ;;  %v1009_v16 = vld [vmem:[#allocation2 + $0x8] sm:$0xff]  ;;  %v4172_v19 = vcombine.high %v1145_v10, %v1149_v12 }
 0x322   :  { %2713 = vmatprep.subr.bf16.mxu1 %v4220_v22  ;;  %2623 = vmatmul.mubr.bf16.vlgmr.msra.gmra.mxu0 %v5174_v25  ;;  %v1013_v17 = vld [vmem:[#allocation2 + $0x28] sm:$0xff]  ;;  %v4171_v22 = vcombine.low %v1145_v10, %v1149_v12 }
 0x323   :  { %2673 = vmatpush1.bf16.msra.mxu0 %v4091_v29  ;;  %2704 = vmatprep.mubr.bf16.mxu0 %v5166_v57  ;;  %v1137_v18 = vld [vmem:[#allocation2 + $0x408] sm:$0xff]  ;;  %v4036_v23 = vcombine.high %v1009_v16, %v1013_v17 }
 0x324   :  { %2664 = vmatmul.mubr.bf16.vlgmr.msra.gmra.mxu1 %v5178_v28  ;;  %2674 = vmatprep.subr.bf16.mxu0 %v4084_v30  ;;  %v1141_v20 = vld [vmem:[#allocation2 + $0x428] sm:$0xff]  ;;  %v4035_v30 = vcombine.low %v1009_v16, %v1013_v17 }
 0x325   :  { %2714 = vmatpush1.bf16.msra.mxu1 %v4219_v51  ;;  %2745 = vmatprep.mubr.bf16.mxu1 %v5168_v58  ;;  %v1129_v24 = vld [vmem:[#allocation2 + $0x3c8] sm:$0xff]  ;;  %v4164_v29 = vcombine.high %v1137_v18, %v1141_v20  ;;  %v4163_v34 = vcombine.low %v1137_v18, %v1141_v20 }
 0x326   :  { %2715 = vmatprep.subr.bf16.mxu1 %v4212_v37  ;;  %v1133_v26 = vld [vmem:[#allocation2 + $0x3e8] sm:$0xff] }
 0x327   :  { %2675 = vmatpush1.bf16.msra.mxu0 %v4083_v49  ;;  %v1257_v27 = vld [vmem:[#allocation2 + $0x7c8] sm:$0xff]  ;;  %v4156_v52 = vcombine.high %v1129_v24, %v1133_v26 }
 0x328   :  { %2676 = vmatprep.subr.bf16.mxu0 %v4076_v39  ;;  %v1261_v51 = vld [vmem:[#allocation2 + $0x7e8] sm:$0xff]  ;;  %v4155_v39 = vcombine.low %v1129_v24, %v1133_v26 }
 0x329   :  { %2716 = vmatpush1.bf16.msra.mxu1 %v4211_v50  ;;  %v1121_v36 = vld [vmem:[#allocation2 + $0x388] sm:$0xff]  ;;  %v4284_v49 = vcombine.high %v1257_v27, %v1261_v51  ;;  %v4283_v40 = vcombine.low %v1257_v27, %v1261_v51 }
 0x32a   :  { %2717 = vmatprep.subr.bf16.mxu1 %v4204_v45  ;;  %v1125_v37 = vld [vmem:[#allocation2 + $0x3a8] sm:$0xff] }
 0x32b   :  { %2677 = vmatpush1.bf16.msra.mxu0 %v4075_v46  ;;  %v1249_v38 = vld [vmem:[#allocation2 + $0x788] sm:$0xff]  ;;  %v4148_v41 = vcombine.high %v1121_v36, %v1125_v37 }
 0x32c   :  { %2678 = vmatprep.subr.bf16.mxu0 %v4068_v48  ;;  %v1253_v50 = vld [vmem:[#allocation2 + $0x7a8] sm:$0xff]  ;;  %v4147_v48 = vcombine.low %v1121_v36, %v1125_v37 }
 0x32d   :  { %2718 = vmatpush1.bf16.msra.mxu1 %v4203_v47  ;;  %v1113_v43 = vld [vmem:[#allocation2 + $0x348] sm:$0xff]  ;;  %v4276_v46 = vcombine.high %v1249_v38, %v1253_v50  ;;  %v4275_v60 = vcombine.low %v1249_v38, %v1253_v50  ;;  %v1066_v38 = vld [vmem:[#allocation2 + $0x1d0] sm:$0xff] }
 0x32e   :  { %2719 = vmatprep.subr.bf16.mxu1 %v4196_v55  ;;  %v1117_v45 = vld [vmem:[#allocation2 + $0x368] sm:$0xff]  ;;  %v1194_v50 = vld [vmem:[#allocation2 + $0x5d0] sm:$0xff] }
 0x32f   :  { %2679 = vmatpush1.bf16.msra.mxu0 %v4067_v61  ;;  %v1241_v59 = vld [vmem:[#allocation2 + $0x748] sm:$0xff]  ;;  %v4140_v53 = vcombine.high %v1113_v43, %v1117_v45 }
 0x330   :  { %2680 = vmatprep.subr.bf16.mxu0 %v4060_v63  ;;  %v1245_v47 = vld [vmem:[#allocation2 + $0x768] sm:$0xff]  ;;  %v4139_v63 = vcombine.low %v1113_v43, %v1117_v45 }
 0x331   :  { %2720 = vmatpush1.bf16.msra.mxu1 %v4195_v62  ;;  %v1105_v54 = vld [vmem:[#allocation2 + $0x308] sm:$0xff]  ;;  %v4268_v61 = vcombine.high %v1241_v59, %v1245_v47  ;;  %v4267_v0 = vcombine.low %v1241_v59, %v1245_v47  ;;  %v1058_v59 = vld [vmem:[#allocation2 + $0x190] sm:$0xff] }
 0x332   :  { %2721 = vmatprep.subr.bf16.mxu1 %v4188_v3  ;;  %v1109_v55 = vld [vmem:[#allocation2 + $0x328] sm:$0xff]  ;;  %v1186_v47 = vld [vmem:[#allocation2 + $0x590] sm:$0xff] }
 0x333   :  { %2681 = vmatpush1.bf16.msra.mxu0 %v4059_v5  ;;  %v1233_v56 = vld [vmem:[#allocation2 + $0x708] sm:$0xff]  ;;  %v4132_v1 = vcombine.high %v1105_v54, %v1109_v55 }
 0x334   :  { %2682 = vmatprep.subr.bf16.mxu0 %v4052_v7  ;;  %v1237_v62 = vld [vmem:[#allocation2 + $0x728] sm:$0xff]  ;;  %v4131_v7 = vcombine.low %v1105_v54, %v1109_v55 }
 0x335   :  { %2722 = vmatpush1.bf16.msra.mxu1 %v4187_v6  ;;  %v1097_v2 = vld [vmem:[#allocation2 + $0x2c8] sm:$0xff]  ;;  %v4260_v5 = vcombine.high %v1233_v56, %v1237_v62  ;;  %v4259_v8 = vcombine.low %v1233_v56, %v1237_v62  ;;  %v1054_v62 = vld [vmem:[#allocation2 + $0x170] sm:$0xff] }
 0x336   :  { %2723 = vmatprep.subr.bf16.mxu1 %v4180_v11  ;;  %v1101_v3 = vld [vmem:[#allocation2 + $0x2e8] sm:$0xff] }
 0x337   :  { %2683 = vmatpush1.bf16.msra.mxu0 %v4051_v13  ;;  %v1225_v4 = vld [vmem:[#allocation2 + $0x6c8] sm:$0xff]  ;;  %v4124_v9 = vcombine.high %v1097_v2, %v1101_v3 }
 0x338   :  { %2684 = vmatprep.subr.bf16.mxu0 %v4044_v15  ;;  %v1229_v6 = vld [vmem:[#allocation2 + $0x6e8] sm:$0xff]  ;;  %v4123_v15 = vcombine.low %v1097_v2, %v1101_v3 }
 0x339   :  { %2724 = vmatpush1.bf16.msra.mxu1 %v4179_v14  ;;  %v1089_v10 = vld [vmem:[#allocation2 + $0x288] sm:$0xff]  ;;  %v4252_v13 = vcombine.high %v1225_v4, %v1229_v6  ;;  %v4251_v16 = vcombine.low %v1225_v4, %v1229_v6  ;;  %v1046_v6 = vld [vmem:[#allocation2 + $0x130] sm:$0xff] }
 0x33a   :  { %2725 = vmatprep.subr.bf16.mxu1 %v4172_v19  ;;  %v1093_v11 = vld [vmem:[#allocation2 + $0x2a8] sm:$0xff] }
 0x33b   :  { %2685 = vmatpush1.bf16.msra.mxu0 %v4043_v21  ;;  %v1217_v12 = vld [vmem:[#allocation2 + $0x688] sm:$0xff]  ;;  %v4116_v17 = vcombine.high %v1089_v10, %v1093_v11 }
 0x33c   :  { %2686 = vmatprep.subr.bf16.mxu0 %v4036_v23  ;;  %v1221_v14 = vld [vmem:[#allocation2 + $0x6a8] sm:$0xff]  ;;  %v4115_v23 = vcombine.low %v1089_v10, %v1093_v11 }
 0x33d   :  { %2726 = vmatpush1.bf16.msra.mxu1 %v4171_v22  ;;  %v1081_v18 = vld [vmem:[#allocation2 + $0x248] sm:$0xff]  ;;  %v4244_v21 = vcombine.high %v1217_v12, %v1221_v14  ;;  %v4243_v24 = vcombine.low %v1217_v12, %v1221_v14  ;;  %v1038_v14 = vld [vmem:[#allocation2 + $0xf0] sm:$0xff] }
 0x33e   :  { %2727 = vmatprep.subr.bf16.mxu1 %v4164_v29  ;;  %v1085_v19 = vld [vmem:[#allocation2 + $0x268] sm:$0xff] }
 0x33f   :  { %2687 = vmatpush1.bf16.msra.mxu0 %v4035_v30  ;;  %v1209_v20 = vld [vmem:[#allocation2 + $0x648] sm:$0xff]  ;;  %v4108_v26 = vcombine.high %v1081_v18, %v1085_v19 }
 0x340   :  { %2688 = vmatprep.subr.bf16.mxu0 %v4156_v52  ;;  %v1213_v22 = vld [vmem:[#allocation2 + $0x668] sm:$0xff]  ;;  %v4107_v52 = vcombine.low %v1081_v18, %v1085_v19 }
 0x341   :  { %2728 = vmatpush1.bf16.msra.mxu1 %v4163_v34  ;;  %v1073_v27 = vld [vmem:[#allocation2 + $0x208] sm:$0xff]  ;;  %v4236_v30 = vcombine.high %v1209_v20, %v1213_v22  ;;  %v4235_v36 = vcombine.low %v1209_v20, %v1213_v22  ;;  %v1030_v22 = vld [vmem:[#allocation2 + $0xb0] sm:$0xff] }
 0x342   :  { %2729 = vmatprep.subr.bf16.mxu1 %v4284_v49  ;;  %v1077_v29 = vld [vmem:[#allocation2 + $0x228] sm:$0xff]  ;;  %v1070_v49 = vld [vmem:[#allocation2 + $0x1f0] sm:$0xff] }
 0x343   :  { %2689 = vmatpush2.bf16.msra.mxu0 %v4155_v39  ;;  %v1201_v51 = vld [vmem:[#allocation2 + $0x608] sm:$0xff]  ;;  %v4100_v37 = vcombine.high %v1073_v27, %v1077_v29  ;;  %v4094_v45 = vcombine.high %v1066_v38, %v1070_v49 }
 0x344   :  { %2690 = vmatprep.subr.bf16.mxu0 %v4148_v41  ;;  %v1205_v34 = vld [vmem:[#allocation2 + $0x628] sm:$0xff]  ;;  %v4099_v41 = vcombine.low %v1073_v27, %v1077_v29 }
 0x345   :  { %2730 = vmatpush2.bf16.msra.mxu1 %v4283_v40  ;;  %v4228_v39 = vcombine.high %v1201_v51, %v1205_v34  ;;  %v1198_v40 = vld [vmem:[#allocation2 + $0x5f0] sm:$0xff]  ;;  %v4227_v43 = vcombine.low %v1201_v51, %v1205_v34 }
 0x346   :  { %2731 = vmatprep.subr.bf16.mxu1 %v4276_v46  ;;  %v1062_v46 = vld [vmem:[#allocation2 + $0x1b0] sm:$0xff]  ;;  %v4221_v54 = vcombine.low %v1194_v50, %v1198_v40 }
 0x347   :  { %2691 = vmatpush2.bf16.msra.mxu0 %v4147_v48  ;;  %v4222_v48 = vcombine.high %v1194_v50, %v1198_v40  ;;  %v4086_v55 = vcombine.high %v1058_v59, %v1062_v46  ;;  %v1022_v34 = vld [vmem:[#allocation2 + $0x70] sm:$0xff] }
 0x348   :  { %2692 = vmatprep.subr.bf16.mxu0 %v4140_v53  ;;  %v4093_v53 = vcombine.low %v1066_v38, %v1070_v49  ;;  %v1014_v40 = vld [vmem:[#allocation2 + $0x30] sm:$0xff] }
 0x349   :  { %2732 = vmatpush2.bf16.msra.mxu1 %v4275_v60  ;;  %v1190_v60 = vld [vmem:[#allocation2 + $0x5b0] sm:$0xff] }
 0x34a   :  { %2733 = vmatprep.subr.bf16.mxu1 %v4268_v61  ;;  %v4214_v56 = vcombine.high %v1186_v47, %v1190_v60  ;;  %v1050_v61 = vld [vmem:[#allocation2 + $0x150] sm:$0xff]  ;;  %v4213_v2 = vcombine.low %v1186_v47, %v1190_v60 }
 0x34b   :  { %2693 = vmatpush2.bf16.msra.mxu0 %v4139_v63  ;;  %v1178_v63 = vld [vmem:[#allocation2 + $0x550] sm:$0xff]  ;;  %v4078_v3 = vcombine.high %v1050_v61, %v1054_v62 }
 0x34c   :  { %2694 = vmatprep.subr.bf16.mxu0 %v4132_v1  ;;  %v4085_v1 = vcombine.low %v1058_v59, %v1062_v46  ;;  %v1134_v60 = vld [vmem:[#allocation2 + $0x3f0] sm:$0xff] }
 0x34d   :  { %2734 = vmatpush2.bf16.msra.mxu1 %v4267_v0  ;;  %v1182_v0 = vld [vmem:[#allocation2 + $0x570] sm:$0xff] }
 0x34e   :  { %2735 = vmatprep.subr.bf16.mxu1 %v4260_v5  ;;  %v4206_v4 = vcombine.high %v1178_v63, %v1182_v0  ;;  %v1042_v5 = vld [vmem:[#allocation2 + $0x110] sm:$0xff]  ;;  %v4205_v10 = vcombine.low %v1178_v63, %v1182_v0 }
 0x34f   :  { %2695 = vmatpush2.bf16.msra.mxu0 %v4131_v7  ;;  %v1170_v7 = vld [vmem:[#allocation2 + $0x510] sm:$0xff]  ;;  %v4070_v11 = vcombine.high %v1042_v5, %v1046_v6 }
 0x350   :  { %2696 = vmatprep.subr.bf16.mxu0 %v4124_v9  ;;  %v4077_v9 = vcombine.low %v1050_v61, %v1054_v62  ;;  %v1122_v63 = vld [vmem:[#allocation2 + $0x390] sm:$0xff] }
 0x351   :  { %2736 = vmatpush2.bf16.msra.mxu1 %v4259_v8  ;;  %v1174_v8 = vld [vmem:[#allocation2 + $0x530] sm:$0xff] }
 0x352   :  { %2737 = vmatprep.subr.bf16.mxu1 %v4252_v13  ;;  %v4198_v12 = vcombine.high %v1170_v7, %v1174_v8  ;;  %v1034_v13 = vld [vmem:[#allocation2 + $0xd0] sm:$0xff]  ;;  %v4197_v18 = vcombine.low %v1170_v7, %v1174_v8 }
 0x353   :  { %2697 = vmatpush2.bf16.msra.mxu0 %v4123_v15  ;;  %v1162_v15 = vld [vmem:[#allocation2 + $0x4d0] sm:$0xff]  ;;  %v4062_v19 = vcombine.high %v1034_v13, %v1038_v14 }
 0x354   :  { %2698 = vmatprep.subr.bf16.mxu0 %v4116_v17  ;;  %v4069_v17 = vcombine.low %v1042_v5, %v1046_v6  ;;  %v1126_v0 = vld [vmem:[#allocation2 + $0x3b0] sm:$0xff] }
 0x355   :  { %2738 = vmatpush2.bf16.msra.mxu1 %v4251_v16  ;;  %v1166_v16 = vld [vmem:[#allocation2 + $0x4f0] sm:$0xff]  ;;  %v4150_v5 = vcombine.high %v1122_v63, %v1126_v0 }
 0x356   :  { %2739 = vmatprep.subr.bf16.mxu1 %v4244_v21  ;;  %v4190_v20 = vcombine.high %v1162_v15, %v1166_v16  ;;  %v1026_v21 = vld [vmem:[#allocation2 + $0x90] sm:$0xff]  ;;  %v4189_v27 = vcombine.low %v1162_v15, %v1166_v16 }
 0x357   :  { %2699 = vmatpush2.bf16.msra.mxu0 %v4115_v23  ;;  %v1154_v23 = vld [vmem:[#allocation2 + $0x490] sm:$0xff]  ;;  %v4054_v29 = vcombine.high %v1026_v21, %v1030_v22 }
 0x358   :  { %2700 = vmatprep.subr.bf16.mxu0 %v4108_v26  ;;  %v4061_v26 = vcombine.low %v1034_v13, %v1038_v14  ;;  %v1114_v7 = vld [vmem:[#allocation2 + $0x350] sm:$0xff] }
 0x359   :  { %2740 = vmatpush2.bf16.msra.mxu1 %v4243_v24  ;;  %v1158_v24 = vld [vmem:[#allocation2 + $0x4b0] sm:$0xff] }
 0x35a   :  { %2741 = vmatprep.subr.bf16.mxu1 %v4236_v30  ;;  %v4182_v51 = vcombine.high %v1154_v23, %v1158_v24  ;;  %v1018_v30 = vld [vmem:[#allocation2 + $0x50] sm:$0xff]  ;;  %v4181_v38 = vcombine.low %v1154_v23, %v1158_v24 }
 0x35b   :  { %2701 = vmatpush2.bf16.msra.mxu0 %v4107_v52  ;;  %v1146_v52 = vld [vmem:[#allocation2 + $0x450] sm:$0xff]  ;;  %v4046_v49 = vcombine.high %v1018_v30, %v1022_v34 }
 0x35c   :  { %2702 = vmatprep.subr.bf16.mxu0 %v4100_v37  ;;  %v4053_v37 = vcombine.low %v1026_v21, %v1030_v22  ;;  %v1118_v8 = vld [vmem:[#allocation2 + $0x370] sm:$0xff] }
 0x35d   :  { %2742 = vmatpush2.bf16.msra.mxu1 %v4235_v36  ;;  %v1150_v36 = vld [vmem:[#allocation2 + $0x470] sm:$0xff]  ;;  %v4142_v13 = vcombine.high %v1114_v7, %v1118_v8 }
 0x35e   :  { %2743 = vmatprep.subr.bf16.mxu1 %v4228_v39  ;;  %v4174_v50 = vcombine.high %v1146_v52, %v1150_v36  ;;  %v1010_v39 = vld [vmem:[#allocation2 + $0x10] sm:$0xff]  ;;  %v4173_v59 = vcombine.low %v1146_v52, %v1150_v36 }
 0x35f   :  { %2703 = vmatpush2.bf16.msra.mxu0 %v4099_v41  ;;  %v1138_v41 = vld [vmem:[#allocation2 + $0x410] sm:$0xff]  ;;  %v4038_v46 = vcombine.high %v1010_v39, %v1014_v40 }
 0x360   :  { %2754 = vmatprep.subr.bf16.mxu0 %v4094_v45  ;;  %v4045_v45 = vcombine.low %v1018_v30, %v1022_v34  ;;  %v1106_v15 = vld [vmem:[#allocation2 + $0x310] sm:$0xff] }
 0x361   :  { %2744 = vmatpush2.bf16.msra.mxu1 %v4227_v43  ;;  %v1142_v43 = vld [vmem:[#allocation2 + $0x430] sm:$0xff] }
 0x362   :  { %2795 = vmatprep.subr.bf16.mxu1 %v4222_v48  ;;  %2705 = vmatmul.mubr.bf16.vlgmr.msra.gmra.mxu0 %v5174_v25  ;;  %v4166_v47 = vcombine.high %v1138_v41, %v1142_v43  ;;  %v1130_v48 = vld [vmem:[#allocation2 + $0x3d0] sm:$0xff] }
 0x363   :  { %2755 = vmatpush1.bf16.msra.mxu0 %v4093_v53  ;;  %2786 = vmatprep.mubr.bf16.mxu0 %v5166_v57  ;;  %v1258_v53 = vld [vmem:[#allocation2 + $0x7d0] sm:$0xff]  ;;  %v4158_v61 = vcombine.high %v1130_v48, %v1134_v60 }
 0x364   :  { %2746 = vmatmul.mubr.bf16.vlgmr.msra.gmra.mxu1 %v5178_v28  ;;  %2756 = vmatprep.subr.bf16.mxu0 %v4086_v55  ;;  %v4037_v55 = vcombine.low %v1010_v39, %v1014_v40  ;;  %v1110_v16 = vld [vmem:[#allocation2 + $0x330] sm:$0xff] }
 0x365   :  { %2796 = vmatpush1.bf16.msra.mxu1 %v4221_v54  ;;  %2827 = vmatprep.mubr.bf16.mxu1 %v5168_v58  ;;  %v1262_v54 = vld [vmem:[#allocation2 + $0x7f0] sm:$0xff]  ;;  %v4134_v21 = vcombine.high %v1106_v15, %v1110_v16 }
 0x366   :  { %2797 = vmatprep.subr.bf16.mxu1 %v4214_v56  ;;  %v4165_v56 = vcombine.low %v1138_v41, %v1142_v43  ;;  %v4286_v62 = vcombine.high %v1258_v53, %v1262_v54  ;;  %v1098_v23 = vld [vmem:[#allocation2 + $0x2d0] sm:$0xff] }
 0x367   :  { %2757 = vmatpush1.bf16.msra.mxu0 %v4085_v1  ;;  %v1250_v1 = vld [vmem:[#allocation2 + $0x790] sm:$0xff] }
 0x368   :  { %2758 = vmatprep.subr.bf16.mxu0 %v4078_v3  ;;  %v4157_v3 = vcombine.low %v1130_v48, %v1134_v60  ;;  %v1102_v24 = vld [vmem:[#allocation2 + $0x2f0] sm:$0xff] }
 0x369   :  { %2798 = vmatpush1.bf16.msra.mxu1 %v4213_v2  ;;  %v1254_v2 = vld [vmem:[#allocation2 + $0x7b0] sm:$0xff]  ;;  %v4126_v30 = vcombine.high %v1098_v23, %v1102_v24 }
 0x36a   :  { %2799 = vmatprep.subr.bf16.mxu1 %v4206_v4  ;;  %v4285_v4 = vcombine.low %v1258_v53, %v1262_v54  ;;  %v4278_v6 = vcombine.high %v1250_v1, %v1254_v2  ;;  %v1090_v52 = vld [vmem:[#allocation2 + $0x290] sm:$0xff] }
 0x36b   :  { %2759 = vmatpush1.bf16.msra.mxu0 %v4077_v9  ;;  %v1242_v9 = vld [vmem:[#allocation2 + $0x750] sm:$0xff] }
 0x36c   :  { %2760 = vmatprep.subr.bf16.mxu0 %v4070_v11  ;;  %v4149_v11 = vcombine.low %v1122_v63, %v1126_v0  ;;  %v1094_v36 = vld [vmem:[#allocation2 + $0x2b0] sm:$0xff] }
 0x36d   :  { %2800 = vmatpush1.bf16.msra.mxu1 %v4205_v10  ;;  %v1246_v10 = vld [vmem:[#allocation2 + $0x770] sm:$0xff]  ;;  %v4118_v39 = vcombine.high %v1090_v52, %v1094_v36 }
 0x36e   :  { %2801 = vmatprep.subr.bf16.mxu1 %v4198_v12  ;;  %v4277_v12 = vcombine.low %v1250_v1, %v1254_v2  ;;  %v4270_v14 = vcombine.high %v1242_v9, %v1246_v10  ;;  %v1082_v41 = vld [vmem:[#allocation2 + $0x250] sm:$0xff]  ;;  %v1067_v1 = vld [vmem:[#allocation2 + $0x1d8] sm:$0xff] }
 0x36f   :  { %2761 = vmatpush1.bf16.msra.mxu0 %v4069_v17  ;;  %v1234_v17 = vld [vmem:[#allocation2 + $0x710] sm:$0xff]  ;;  %v1071_v2 = vld [vmem:[#allocation2 + $0x1f8] sm:$0xff] }
 0x370   :  { %2762 = vmatprep.subr.bf16.mxu0 %v4062_v19  ;;  %v4141_v19 = vcombine.low %v1114_v7, %v1118_v8  ;;  %v1086_v43 = vld [vmem:[#allocation2 + $0x270] sm:$0xff]  ;;  %v4096_v7 = vcombine.high %v1067_v1, %v1071_v2 }
 0x371   :  { %2802 = vmatpush1.bf16.msra.mxu1 %v4197_v18  ;;  %v1238_v18 = vld [vmem:[#allocation2 + $0x730] sm:$0xff]  ;;  %v4110_v48 = vcombine.high %v1082_v41, %v1086_v43 }
 0x372   :  { %2803 = vmatprep.subr.bf16.mxu1 %v4190_v20  ;;  %v4269_v20 = vcombine.low %v1242_v9, %v1246_v10  ;;  %v4262_v22 = vcombine.high %v1234_v17, %v1238_v18  ;;  %v1074_v53 = vld [vmem:[#allocation2 + $0x210] sm:$0xff]  ;;  %v1059_v9 = vld [vmem:[#allocation2 + $0x198] sm:$0xff] }
 0x373   :  { %2763 = vmatpush1.bf16.msra.mxu0 %v4061_v26  ;;  %v1226_v26 = vld [vmem:[#allocation2 + $0x6d0] sm:$0xff]  ;;  %v1063_v10 = vld [vmem:[#allocation2 + $0x1b8] sm:$0xff] }
 0x374   :  { %2764 = vmatprep.subr.bf16.mxu0 %v4054_v29  ;;  %v4133_v29 = vcombine.low %v1106_v15, %v1110_v16  ;;  %v1078_v54 = vld [vmem:[#allocation2 + $0x230] sm:$0xff]  ;;  %v4088_v15 = vcombine.high %v1059_v9, %v1063_v10 }
 0x375   :  { %2804 = vmatpush1.bf16.msra.mxu1 %v4189_v27  ;;  %v1230_v27 = vld [vmem:[#allocation2 + $0x6f0] sm:$0xff]  ;;  %v4102_v63 = vcombine.high %v1074_v53, %v1078_v54 }
 0x376   :  { %2805 = vmatprep.subr.bf16.mxu1 %v4182_v51  ;;  %v4261_v51 = vcombine.low %v1234_v17, %v1238_v18  ;;  %v4254_v34 = vcombine.high %v1226_v26, %v1230_v27  ;;  %v1051_v17 = vld [vmem:[#allocation2 + $0x158] sm:$0xff] }
 0x377   :  { %2765 = vmatpush1.bf16.msra.mxu0 %v4053_v37  ;;  %v1218_v37 = vld [vmem:[#allocation2 + $0x690] sm:$0xff]  ;;  %v1055_v18 = vld [vmem:[#allocation2 + $0x178] sm:$0xff] }
 0x378   :  { %2766 = vmatprep.subr.bf16.mxu0 %v4046_v49  ;;  %v4125_v49 = vcombine.low %v1098_v23, %v1102_v24  ;;  %v4080_v23 = vcombine.high %v1051_v17, %v1055_v18 }
 0x379   :  { %2806 = vmatpush1.bf16.msra.mxu1 %v4181_v38  ;;  %v1222_v38 = vld [vmem:[#allocation2 + $0x6b0] sm:$0xff] }
 0x37a   :  { %2807 = vmatprep.subr.bf16.mxu1 %v4174_v50  ;;  %v4253_v50 = vcombine.low %v1226_v26, %v1230_v27  ;;  %v4246_v40 = vcombine.high %v1218_v37, %v1222_v38  ;;  %v1043_v26 = vld [vmem:[#allocation2 + $0x118] sm:$0xff] }
 0x37b   :  { %2767 = vmatpush1.bf16.msra.mxu0 %v4045_v45  ;;  %v1210_v45 = vld [vmem:[#allocation2 + $0x650] sm:$0xff]  ;;  %v1047_v27 = vld [vmem:[#allocation2 + $0x138] sm:$0xff] }
 0x37c   :  { %2768 = vmatprep.subr.bf16.mxu0 %v4038_v46  ;;  %v4117_v46 = vcombine.low %v1090_v52, %v1094_v36  ;;  %v4072_v52 = vcombine.high %v1043_v26, %v1047_v27 }
 0x37d   :  { %2808 = vmatpush1.bf16.msra.mxu1 %v4173_v59  ;;  %v1214_v59 = vld [vmem:[#allocation2 + $0x670] sm:$0xff] }
 0x37e   :  { %2809 = vmatprep.subr.bf16.mxu1 %v4166_v47  ;;  %v4245_v47 = vcombine.low %v1218_v37, %v1222_v38  ;;  %v4238_v60 = vcombine.high %v1210_v45, %v1214_v59  ;;  %v1035_v37 = vld [vmem:[#allocation2 + $0xd8] sm:$0xff] }
 0x37f   :  { %2769 = vmatpush1.bf16.msra.mxu0 %v4037_v55  ;;  %v1202_v55 = vld [vmem:[#allocation2 + $0x610] sm:$0xff]  ;;  %v1039_v38 = vld [vmem:[#allocation2 + $0xf8] sm:$0xff] }
 0x380   :  { %2770 = vmatprep.subr.bf16.mxu0 %v4158_v61  ;;  %v4109_v61 = vcombine.low %v1082_v41, %v1086_v43  ;;  %v1027_v41 = vld [vmem:[#allocation2 + $0x98] sm:$0xff] }
 0x381   :  { %2810 = vmatpush1.bf16.msra.mxu1 %v4165_v56  ;;  %v1206_v56 = vld [vmem:[#allocation2 + $0x630] sm:$0xff]  ;;  %v1031_v43 = vld [vmem:[#allocation2 + $0xb8] sm:$0xff] }
 0x382   :  { %2811 = vmatprep.subr.bf16.mxu1 %v4286_v62  ;;  %v4237_v62 = vcombine.low %v1210_v45, %v1214_v59  ;;  %v4230_v0 = vcombine.high %v1202_v55, %v1206_v56  ;;  %v1155_v45 = vld [vmem:[#allocation2 + $0x498] sm:$0xff] }
 0x383   :  { %2771 = vmatpush2.bf16.msra.mxu0 %v4157_v3  ;;  %v1195_v3 = vld [vmem:[#allocation2 + $0x5d8] sm:$0xff] }
 0x384   :  { %2772 = vmatprep.subr.bf16.mxu0 %v4150_v5  ;;  %v4101_v5 = vcombine.low %v1074_v53, %v1078_v54  ;;  %v1159_v59 = vld [vmem:[#allocation2 + $0x4b8] sm:$0xff] }
 0x385   :  { %2812 = vmatpush2.bf16.msra.mxu1 %v4285_v4  ;;  %v1199_v4 = vld [vmem:[#allocation2 + $0x5f8] sm:$0xff] }
 0x386   :  { %2813 = vmatprep.subr.bf16.mxu1 %v4278_v6  ;;  %v4229_v6 = vcombine.low %v1202_v55, %v1206_v56  ;;  %v4224_v8 = vcombine.high %v1195_v3, %v1199_v4  ;;  %v1019_v53 = vld [vmem:[#allocation2 + $0x58] sm:$0xff] }
 0x387   :  { %2773 = vmatpush2.bf16.msra.mxu0 %v4149_v11  ;;  %v1187_v11 = vld [vmem:[#allocation2 + $0x598] sm:$0xff] }
 0x388   :  { %2774 = vmatprep.subr.bf16.mxu0 %v4142_v13  ;;  %v4095_v13 = vcombine.low %v1067_v1, %v1071_v2  ;;  %v1023_v54 = vld [vmem:[#allocation2 + $0x78] sm:$0xff] }
 0x389   :  { %2814 = vmatpush2.bf16.msra.mxu1 %v4277_v12  ;;  %v1191_v12 = vld [vmem:[#allocation2 + $0x5b8] sm:$0xff] }
 0x38a   :  { %2815 = vmatprep.subr.bf16.mxu1 %v4270_v14  ;;  %v4223_v14 = vcombine.low %v1195_v3, %v1199_v4  ;;  %v4216_v16 = vcombine.high %v1187_v11, %v1191_v12  ;;  %v1147_v55 = vld [vmem:[#allocation2 + $0x458] sm:$0xff] }
 0x38b   :  { %2775 = vmatpush2.bf16.msra.mxu0 %v4141_v19  ;;  %v1179_v19 = vld [vmem:[#allocation2 + $0x558] sm:$0xff] }
 0x38c   :  { %2776 = vmatprep.subr.bf16.mxu0 %v4134_v21  ;;  %v4087_v21 = vcombine.low %v1059_v9, %v1063_v10  ;;  %v1151_v56 = vld [vmem:[#allocation2 + $0x478] sm:$0xff] }
 0x38d   :  { %2816 = vmatpush2.bf16.msra.mxu1 %v4269_v20  ;;  %v1183_v20 = vld [vmem:[#allocation2 + $0x578] sm:$0xff] }
 0x38e   :  { %2817 = vmatprep.subr.bf16.mxu1 %v4262_v22  ;;  %v4215_v22 = vcombine.low %v1187_v11, %v1191_v12  ;;  %v4208_v24 = vcombine.high %v1179_v19, %v1183_v20  ;;  %v1011_v1 = vld [vmem:[#allocation2 + $0x18] sm:$0xff] }
 0x38f   :  { %2777 = vmatpush2.bf16.msra.mxu0 %v4133_v29  ;;  %v1171_v29 = vld [vmem:[#allocation2 + $0x518] sm:$0xff] }
 0x390   :  { %2778 = vmatprep.subr.bf16.mxu0 %v4126_v30  ;;  %v4079_v30 = vcombine.low %v1051_v17, %v1055_v18  ;;  %v1015_v2 = vld [vmem:[#allocation2 + $0x38] sm:$0xff] }
 0x391   :  { %2818 = vmatpush2.bf16.msra.mxu1 %v4261_v51  ;;  %v1175_v51 = vld [vmem:[#allocation2 + $0x538] sm:$0xff] }
 0x392   :  { %2819 = vmatprep.subr.bf16.mxu1 %v4254_v34  ;;  %v4207_v34 = vcombine.low %v1179_v19, %v1183_v20  ;;  %v4200_v36 = vcombine.high %v1171_v29, %v1175_v51  ;;  %v1139_v3 = vld [vmem:[#allocation2 + $0x418] sm:$0xff] }
 0x393   :  { %2779 = vmatpush2.bf16.msra.mxu0 %v4125_v49  ;;  %v1163_v49 = vld [vmem:[#allocation2 + $0x4d8] sm:$0xff] }
 0x394   :  { %2780 = vmatprep.subr.bf16.mxu0 %v4118_v39  ;;  %v4071_v39 = vcombine.low %v1043_v26, %v1047_v27  ;;  %v1143_v4 = vld [vmem:[#allocation2 + $0x438] sm:$0xff] }
 0x395   :  { %2820 = vmatpush2.bf16.msra.mxu1 %v4253_v50  ;;  %v1167_v50 = vld [vmem:[#allocation2 + $0x4f8] sm:$0xff] }
 0x396   :  { %2821 = vmatprep.subr.bf16.mxu1 %v4246_v40  ;;  %v4064_v40 = vcombine.high %v1035_v37, %v1039_v38  ;;  %v1131_v9 = vld [vmem:[#allocation2 + $0x3d8] sm:$0xff] }
 0x397   :  { %2781 = vmatpush2.bf16.msra.mxu0 %v4117_v46  ;;  %v4063_v46 = vcombine.low %v1035_v37, %v1039_v38  ;;  %v1135_v10 = vld [vmem:[#allocation2 + $0x3f8] sm:$0xff] }
 0x398   :  { %2782 = vmatprep.subr.bf16.mxu0 %v4110_v48  ;;  %v4056_v48 = vcombine.high %v1027_v41, %v1031_v43  ;;  %v1259_v11 = vld [vmem:[#allocation2 + $0x7d8] sm:$0xff] }
 0x399   :  { %2822 = vmatpush2.bf16.msra.mxu1 %v4245_v47  ;;  %v4191_v47 = vcombine.low %v1163_v49, %v1167_v50  ;;  %v1263_v12 = vld [vmem:[#allocation2 + $0x7f8] sm:$0xff] }
 0x39a   :  { %2823 = vmatprep.subr.bf16.mxu1 %v4238_v60  ;;  %v4184_v60 = vcombine.high %v1155_v45, %v1159_v59  ;;  %v1123_v17 = vld [vmem:[#allocation2 + $0x398] sm:$0xff] }
 0x39b   :  { %2783 = vmatpush2.bf16.msra.mxu0 %v4109_v61  ;;  %v4055_v61 = vcombine.low %v1027_v41, %v1031_v43  ;;  %v1127_v18 = vld [vmem:[#allocation2 + $0x3b8] sm:$0xff] }
 0x39c   :  { %2784 = vmatprep.subr.bf16.mxu0 %v4102_v63  ;;  %v4048_v63 = vcombine.high %v1019_v53, %v1023_v54  ;;  %v1251_v19 = vld [vmem:[#allocation2 + $0x798] sm:$0xff] }
 0x39d   :  { %2824 = vmatpush2.bf16.msra.mxu1 %v4237_v62  ;;  %v4183_v62 = vcombine.low %v1155_v45, %v1159_v59  ;;  %v1255_v20 = vld [vmem:[#allocation2 + $0x7b8] sm:$0xff] }
 0x39e   :  { %2825 = vmatprep.subr.bf16.mxu1 %v4230_v0  ;;  %v4176_v0 = vcombine.high %v1147_v55, %v1151_v56  ;;  %v1115_v26 = vld [vmem:[#allocation2 + $0x358] sm:$0xff] }
 0x39f   :  { %2785 = vmatpush2.bf16.msra.mxu0 %v4101_v5  ;;  %v4047_v5 = vcombine.low %v1019_v53, %v1023_v54  ;;  %v1119_v27 = vld [vmem:[#allocation2 + $0x378] sm:$0xff] }
 0x3a0   :  { %2836 = vmatprep.subr.bf16.mxu0 %v4096_v7  ;;  %v4040_v7 = vcombine.high %v1011_v1, %v1015_v2  ;;  %v1107_v37 = vld [vmem:[#allocation2 + $0x318] sm:$0xff] }
 0x3a1   :  { %2826 = vmatpush2.bf16.msra.mxu1 %v4229_v6  ;;  %v4175_v6 = vcombine.low %v1147_v55, %v1151_v56  ;;  %v1111_v38 = vld [vmem:[#allocation2 + $0x338] sm:$0xff] }
 0x3a2   :  { %2877 = vmatprep.subr.bf16.mxu1 %v4224_v8  ;;  %2787 = vmatmul.mubr.bf16.vlgmr.msra.gmra.mxu0 %v5174_v25  ;;  %v4168_v8 = vcombine.high %v1139_v3, %v1143_v4  ;;  %v1099_v41 = vld [vmem:[#allocation2 + $0x2d8] sm:$0xff] }
 0x3a3   :  { %2837 = vmatpush1.bf16.msra.mxu0 %v4095_v13  ;;  %2868 = vmatprep.mubr.bf16.mxu0 %v5166_v57  ;;  %v4199_v57 = vcombine.low %v1171_v29, %v1175_v51  ;;  %v4039_v13 = vcombine.low %v1011_v1, %v1015_v2  ;;  %v1243_v29 = vld [vmem:[#allocation2 + $0x758] sm:$0xff] }
 0x3a4   :  { %2828 = vmatmul.mubr.bf16.vlgmr.msra.gmra.mxu1 %v5178_v28  ;;  %2838 = vmatprep.subr.bf16.mxu0 %v4088_v15  ;;  %v4160_v15 = vcombine.high %v1131_v9, %v1135_v10  ;;  %v1247_v51 = vld [vmem:[#allocation2 + $0x778] sm:$0xff] }
 0x3a5   :  { %2878 = vmatpush1.bf16.msra.mxu1 %v4223_v14  ;;  %2909 = vmatprep.mubr.bf16.mxu1 %v5168_v58  ;;  %v4192_v58 = vcombine.high %v1163_v49, %v1167_v50  ;;  %v4167_v14 = vcombine.low %v1139_v3, %v1143_v4  ;;  %v1235_v49 = vld [vmem:[#allocation2 + $0x718] sm:$0xff] }
 0x3a6   :  { %2879 = vmatprep.subr.bf16.mxu1 %v4216_v16  ;;  %v4288_v16 = vcombine.high %v1259_v11, %v1263_v12  ;;  %v1239_v50 = vld [vmem:[#allocation2 + $0x738] sm:$0xff] }
 0x3a7   :  { %2839 = vmatpush1.bf16.msra.mxu0 %v4087_v21  ;;  %v4159_v21 = vcombine.low %v1131_v9, %v1135_v10  ;;  %v1103_v43 = vld [vmem:[#allocation2 + $0x2f8] sm:$0xff] }
 0x3a8   :  { %2840 = vmatprep.subr.bf16.mxu0 %v4080_v23  ;;  %v4152_v23 = vcombine.high %v1123_v17, %v1127_v18  ;;  %v1227_v45 = vld [vmem:[#allocation2 + $0x6d8] sm:$0xff] }
 0x3a9   :  { %2880 = vmatpush1.bf16.msra.mxu1 %v4215_v22  ;;  %v4287_v22 = vcombine.low %v1259_v11, %v1263_v12  ;;  %v1231_v59 = vld [vmem:[#allocation2 + $0x6f8] sm:$0xff] }
 0x3aa   :  { %2881 = vmatprep.subr.bf16.mxu1 %v4208_v24  ;;  %v4280_v24 = vcombine.high %v1251_v19, %v1255_v20  ;;  %v1091_v53 = vld [vmem:[#allocation2 + $0x298] sm:$0xff] }
 0x3ab   :  { %2841 = vmatpush1.bf16.msra.mxu0 %v4079_v30  ;;  %v4151_v30 = vcombine.low %v1123_v17, %v1127_v18  ;;  %v1095_v54 = vld [vmem:[#allocation2 + $0x2b8] sm:$0xff] }
 0x3ac   :  { %2842 = vmatprep.subr.bf16.mxu0 %v4072_v52  ;;  %v4144_v52 = vcombine.high %v1115_v26, %v1119_v27  ;;  %v1219_v55 = vld [vmem:[#allocation2 + $0x698] sm:$0xff] }
 0x3ad   :  { %2882 = vmatpush1.bf16.msra.mxu1 %v4207_v34  ;;  %v4279_v34 = vcombine.low %v1251_v19, %v1255_v20  ;;  %v1223_v56 = vld [vmem:[#allocation2 + $0x6b8] sm:$0xff]  ;;  %v5192_v19 = vld [vmem:[#allocation9 + $0x13] sm:$0xff] }
 0x3ae   :  { %2883 = vmatprep.subr.bf16.mxu1 %v4200_v36  ;;  %v4272_v36 = vcombine.high %v1243_v29, %v1247_v51  ;;  %v1083_v1 = vld [vmem:[#allocation2 + $0x258] sm:$0xff] }
 0x3af   :  { %2843 = vmatpush1.bf16.msra.mxu0 %v4071_v39  ;;  %v4143_v39 = vcombine.low %v1115_v26, %v1119_v27  ;;  %v1087_v2 = vld [vmem:[#allocation2 + $0x278] sm:$0xff]  ;;  %v1277_v27 = vrot.slane %v5192_v19, %v5105_v35 }
 0x3b0   :  { %2844 = vmatprep.subr.bf16.mxu0 %v4064_v40  ;;  %v4136_v40 = vcombine.high %v1107_v37, %v1111_v38  ;;  %v1211_v3 = vld [vmem:[#allocation2 + $0x658] sm:$0xff] }
 0x3b1   :  { %2884 = vmatpush1.bf16.msra.mxu1 %v4199_v57  ;;  %v4271_v57 = vcombine.low %v1243_v29, %v1247_v51  ;;  %v1215_v4 = vld [vmem:[#allocation2 + $0x678] sm:$0xff]  ;;  %v4619_v29 = vld [vmem:[%s5504_s5 + $0xf0] sm:$0xff]  }
 0x3b2   :  { %2885 = vmatprep.subr.bf16.mxu1 %v4192_v58  ;;  %v4264_v58 = vcombine.high %v1235_v49, %v1239_v50  ;;  %v1075_v9 = vld [vmem:[#allocation2 + $0x218] sm:$0xff] }
 0x3b3   :  { %2845 = vmatpush1.bf16.msra.mxu0 %v4063_v46  ;;  %v4135_v46 = vcombine.low %v1107_v37, %v1111_v38  ;;  %v1079_v10 = vld [vmem:[#allocation2 + $0x238] sm:$0xff]  ;;  %v4605_v37 = vld [vmem:[%s5504_s5 + $0x68] sm:$0xff]  }
 0x3b4   :  { %2846 = vmatprep.subr.bf16.mxu0 %v4056_v48  ;;  %v4128_v48 = vcombine.high %v1099_v41, %v1103_v43  ;;  %v1203_v11 = vld [vmem:[#allocation2 + $0x618] sm:$0xff]  ;;  %v4103_v17 = vcombine.low %v1075_v9, %v1079_v10 }
 0x3b5   :  { %2886 = vmatpush1.bf16.msra.mxu1 %v4191_v47  ;;  %v4263_v47 = vcombine.low %v1235_v49, %v1239_v50  ;;  %v1207_v12 = vld [vmem:[#allocation2 + $0x638] sm:$0xff]  ;;  %v4621_v50 = vld [vmem:[%s5504_s5 + $0xe8] sm:$0xff]  }
 0x3b6   :  { %2887 = vmatprep.subr.bf16.mxu1 %v4184_v60  ;;  %v4256_v60 = vcombine.high %v1227_v45, %v1231_v59  ;;  %v4231_v18 = vcombine.low %v1203_v11, %v1207_v12  ;;  %v4601_v20 = vld [vmem:[%s5504_s5 + $0x78] sm:$0xff]  }
 0x3b7   :  { %2847 = vmatpush1.bf16.msra.mxu0 %v4055_v61  ;;  %v4127_v61 = vcombine.low %v1099_v41, %v1103_v43  ;;  %v4618_v26 = vld [vmem:[%s5504_s5 + $0xb8] sm:$0xff]   ;;  %v4606_v43 = vld [vmem:[%s5504_s5 + $0x28] sm:$0xff]  }
 0x3b8   :  { %2848 = vmatprep.subr.bf16.mxu0 %v4048_v63  ;;  %v4120_v63 = vcombine.high %v1091_v53, %v1095_v54 }
 0x3b9   :  { %2888 = vmatpush1.bf16.msra.mxu1 %v4183_v62  ;;  %v4255_v62 = vcombine.low %v1227_v45, %v1231_v59  ;;  %v4607_v59 = vld [vmem:[%s5504_s5 + $0x60] sm:$0xff]  }
 0x3ba   :  { %2889 = vmatprep.subr.bf16.mxu1 %v4176_v0  ;;  %v4248_v0 = vcombine.high %v1219_v55, %v1223_v56 }
 0x3bb   :  { %2849 = vmatpush1.bf16.msra.mxu0 %v4047_v5  ;;  %v4119_v5 = vcombine.low %v1091_v53, %v1095_v54 }
 0x3bc   :  { %2850 = vmatprep.subr.bf16.mxu0 %v4040_v7  ;;  %v4112_v7 = vcombine.high %v1083_v1, %v1087_v2 }
 0x3bd   :  { %2890 = vmatpush1.bf16.msra.mxu1 %v4175_v6  ;;  %v4247_v6 = vcombine.low %v1219_v55, %v1223_v56  ;;  %v4623_v55 = vld [vmem:[%s5504_s5 + $0xe0] sm:$0xff]  }
 0x3be   :  { %2891 = vmatprep.subr.bf16.mxu1 %v4168_v8  ;;  %v4240_v8 = vcombine.high %v1211_v3, %v1215_v4 }
 0x3bf   :  { %2851 = vmatpush1.bf16.msra.mxu0 %v4039_v13  ;;  %v4111_v13 = vcombine.low %v1083_v1, %v1087_v2  ;;  %v4609_v1 = vld [vmem:[%s5504_s5 + $0x58] sm:$0xff]   ;;  %v4624_v2 = vld [vmem:[%s5504_s5 + $0xa0] sm:$0xff]  }
 0x3c0   :  { %2852 = vmatprep.subr.bf16.mxu0 %v4160_v15  ;;  %v4104_v15 = vcombine.high %v1075_v9, %v1079_v10 }
 0x3c1   :  { %2892 = vmatpush1.bf16.msra.mxu1 %v4167_v14  ;;  %v4239_v14 = vcombine.low %v1211_v3, %v1215_v4 }
 0x3c2   :  { %2893 = vmatprep.subr.bf16.mxu1 %v4288_v16  ;;  %v4232_v16 = vcombine.high %v1203_v11, %v1207_v12  ;;  %v4610_v12 = vld [vmem:[%s5504_s5 + $0x18] sm:$0xff]  }
 0x3c3   :  { %2853 = vmatpush2.bf16.msra.mxu0 %v4159_v21  ;;  %v4617_v21 = vld [vmem:[%s5504_s5 + $0xf8] sm:$0xff]  }
 0x3c4   :  { %2854 = vmatprep.subr.bf16.mxu0 %v4152_v23  ;;  %v4602_v23 = vld [vmem:[%s5504_s5 + $0x38] sm:$0xff]  }
 0x3c5   :  { %2894 = vmatpush2.bf16.msra.mxu1 %v4287_v22  ;;  %v1273_v22 = vrot.slane %v5192_v19, %v5102_v33 }
 0x3c6   :  { %2895 = vmatprep.subr.bf16.mxu1 %v4280_v24  ;;  %v4603_v24 = vld [vmem:[%s5504_s5 + $0x70] sm:$0xff]  }
 0x3c7   :  { %2855 = vmatpush2.bf16.msra.mxu0 %v4151_v30 }
 0x3c8   :  { %2856 = vmatprep.subr.bf16.mxu0 %v4144_v52  ;;  %v4604_v52 = vld [vmem:[%s5504_s5 + $0x30] sm:$0xff]  }
 0x3c9   :  { %2896 = vmatpush2.bf16.msra.mxu1 %v4279_v34 }
 0x3ca   :  { %2897 = vmatprep.subr.bf16.mxu1 %v4272_v36 }
 0x3cb   :  { %2857 = vmatpush2.bf16.msra.mxu0 %v4143_v39 }
 0x3cc   :  { %2858 = vmatprep.subr.bf16.mxu0 %v4136_v40 }
 0x3cd   :  { %2898 = vmatpush2.bf16.msra.mxu1 %v4271_v57 }
 0x3ce   :  { %2899 = vmatprep.subr.bf16.mxu1 %v4264_v58 }
 0x3cf   :  { %2859 = vmatpush2.bf16.msra.mxu0 %v4135_v46  ;;  %v4622_v46 = vld [vmem:[%s5504_s5 + $0xa8] sm:$0xff]  }
 0x3d0   :  { %2860 = vmatprep.subr.bf16.mxu0 %v4128_v48 }
 0x3d1   :  { %2900 = vmatpush2.bf16.msra.mxu1 %v4263_v47 }
 0x3d2   :  { %2901 = vmatprep.subr.bf16.mxu1 %v4256_v60 }
 0x3d3   :  { %2861 = vmatpush2.bf16.msra.mxu0 %v4127_v61 }
 0x3d4   :  { %2862 = vmatprep.subr.bf16.mxu0 %v4120_v63 }
 0x3d5   :  { %2902 = vmatpush2.bf16.msra.mxu1 %v4255_v62 }
 0x3d6   :  { %2903 = vmatprep.subr.bf16.mxu1 %v4248_v0  ;;  %v4608_v0 = vld [vmem:[%s5504_s5 + $0x20] sm:$0xff]  }
 0x3d7   :  { %2863 = vmatpush2.bf16.msra.mxu0 %v4119_v5 }
 0x3d8   :  { %2864 = vmatprep.subr.bf16.mxu0 %v4112_v7  ;;  %v4625_v7 = vld [vmem:[%s5504_s5 + $0xd8] sm:$0xff]  }
 0x3d9   :  { %2904 = vmatpush2.bf16.msra.mxu1 %v4247_v6 }
 0x3da   :  { %2905 = vmatprep.subr.bf16.mxu1 %v4240_v8 }
 0x3db   :  { %2865 = vmatpush2.bf16.msra.mxu0 %v4111_v13  ;;  %v4611_v13 = vld [vmem:[%s5504_s5 + $0x50] sm:$0xff]  }
 0x3dc   :  { %2866 = vmatprep.subr.bf16.mxu0 %v4104_v15 }
 0x3dd   :  { %2906 = vmatpush2.bf16.msra.mxu1 %v4239_v14  ;;  %v4626_v14 = vld [vmem:[%s5504_s5 + $0x98] sm:$0xff]  }
 0x3de   :  { %2907 = vmatprep.subr.bf16.mxu1 %v4232_v16 }
 0x3df   :  { %2867 = vmatpush2.bf16.msra.mxu0 %v4103_v17 }
 0x3e0   :  { %4358 = vmatprep.subr.bf16.mxu0 %v4601_v20  ;;  %v4627_v20 = vld [vmem:[%s5504_s5 + $0xd0] sm:$0xff]  }
 0x3e1   :  { %2908 = vmatpush2.bf16.msra.mxu1 %v4231_v18 }
 0x3e2   :  { %4380 = vmatprep.subr.bf16.mxu1 %v4617_v21  ;;  %v2624_v51 = vpop.f32.mrf.mxu0  ;;  %2869 = vmatmul.mubr.bf16.vlgmr.msra.gmra.mxu0 %v5174_v25  ;;  %v4620_v25 = vld [vmem:[%s5504_s5 + $0xb0] sm:$0xff]  }
 0x3e3   :  { %v2625_v30 = vadd.f32 %v2624_v51, %v1273_v22  ;;  %4359 = vmatpush3.bf16.msra.mxu0 %v4602_v23 }
 0x3e4   :  { %v2665_v34 = vpop.f32.mrf.mxu1  ;;  %2910 = vmatmul.mubr.bf16.vlgmr.msra.gmra.mxu1 %v5178_v28  ;;  %v2626_v36 = vpop.f32.mrf.mxu0  ;;  %4360 = vmatprep.subr.bf16.mxu0 %v4603_v24 }
 0x3e5   :  { %4381 = vmatpush3.bf16.msra.mxu1 %v4618_v26  ;;  %v5227_v38 = vadd.f32 %v2665_v34, %v2625_v30  ;;  %v2627_v49 = vadd.f32 %v2626_v36, %v1277_v27  ;;  %v4612_v26 = vld [vmem:[%s5504_s5 + $0x10] sm:$0xff]   ;;  %v4613_v27 = vld [vmem:[%s5504_s5 + $0x48] sm:$0xff]  }
 0x3e6   :  { %v2667_v28 = vpop.f32.mrf.mxu1  ;;  %4382 = vmatprep.subr.bf16.mxu1 %v4619_v29  ;;  %v2628_v39 = vpop.f32.mrf.mxu0  ;;  %v4628_v29 = vld [vmem:[%s5504_s5 + $0x90] sm:$0xff]  }
 0x3e7   :  { %v2920_v57 = vrot.slane %v5227_v38, 4  ;;  %v2976_v40 = vmul.f32 %v5227_v38, %v5227_v38  ;;  %v5235_v58 = vadd.f32 %v2667_v28, %v2627_v49  ;;  %4361 = vmatpush3.bf16.msra.mxu0 %v4604_v52  ;;  %v4629_v52 = vld [vmem:[%s5504_s5 + $0xc8] sm:$0xff]  }
 0x3e8   :  { %v2669_v41 = vpop.f32.mrf.mxu1  ;;  %v2629_v45 = vpop.f32.mrf.mxu0  ;;  %4362 = vmatprep.subr.bf16.mxu0 %v4605_v37  ;;  %v4614_v49 = vld [vmem:[%s5504_s5 + $0x8] sm:$0xff]  }
 0x3e9   :  { %4383 = vmatpush3.bf16.msra.mxu1 %v4620_v25  ;;  %v2921_v47 = vadd.f32 %v2920_v57, %v5227_v38  ;;  %v2984_v48 = vrot.slane %v2976_v40, 4  ;;  %v2926_v60 = vrot.slane %v5235_v58, 4  ;;  %v2977_v53 = vmul.f32 %v5235_v58, %v5235_v58  ;;  %v4630_v39 = vld [vmem:[%s5504_s5 + $0x88] sm:$0xff]  }
 0x3ea   :  { %v2670_v54 = vpop.f32.mrf.mxu1  ;;  %4384 = vmatprep.subr.bf16.mxu1 %v4621_v50  ;;  %v4615_v50 = vld [vmem:[%s5504_s5 + $0x40] sm:$0xff]  }
 0x3eb   :  { %v2922_v56 = vrot.slane %v2921_v47, 2  ;;  %v2985_v61 = vadd.f32 %v2984_v48, %v2976_v40  ;;  %v2927_v62 = vadd.f32 %v2926_v60, %v5235_v58  ;;  %v2990_v63 = vrot.slane %v2977_v53, 4  ;;  %4363 = vmatpush3.bf16.msra.mxu0 %v4606_v43  ;;  %v4631_v40 = vld [vmem:[%s5504_s5 + $0xc0] sm:$0xff]  }
 0x3ec   :  { %4364 = vmatprep.subr.bf16.mxu0 %v4607_v59  ;;  %v4616_v43 = vld [vmem:[%s5504_s5] sm:$0xff]  }
 0x3ed   :  { %4385 = vmatpush3.bf16.msra.mxu1 %v4622_v46  ;;  %v2923_v3 = vadd.f32 %v2922_v56, %v2921_v47  ;;  %v2986_v4 = vrot.slane %v2985_v61, 2  ;;  %v2928_v5 = vrot.slane %v2927_v62, 2  ;;  %v2991_v6 = vadd.f32 %v2990_v63, %v2977_v53  ;;  %v4632_v59 = vld [vmem:[%s5504_s5 + $0x80] sm:$0xff]   ;;  %v4633_v46 = vld [vmem:[%s5504_s5 + $0x178] sm:$0xff]  }
 0x3ee   :  { %4386 = vmatprep.subr.bf16.mxu1 %v4623_v55  ;;  %v5311_v47 = vld [vmem:[#allocation9 + $0x1b] sm:$0xff]  ;;  %v5313_v48 = vld [vmem:[#allocation9 + $0x23] sm:$0xff] }
 0x3ef   :  { %v2924_v8 = vrot.slane %v2923_v3, 1  ;;  %v2987_v9 = vadd.f32 %v2986_v4, %v2985_v61  ;;  %v2929_v10 = vadd.f32 %v2928_v5, %v2927_v62  ;;  %v2992_v11 = vrot.slane %v2991_v6, 2  ;;  %4365 = vmatpush3.bf16.msra.mxu0 %v4608_v0 }
 0x3f0   :  { %4366 = vmatprep.subr.bf16.mxu0 %v4609_v1  ;;  %v3092_v53 = vrot.slane %v5311_v47, %v5102_v33  ;;  %v3141_v56 = vrot.slane %v5313_v48, %v5102_v33  ;;  %v3096_v62 = vrot.slane %v5311_v47, %v5105_v35  ;;  %v4634_v33 = vld [vmem:[%s5504_s5 + $0x138] sm:$0xff]  }
 0x3f1   :  { %4387 = vmatpush3.bf16.msra.mxu1 %v4624_v2  ;;  %v2925_v15 = vadd.f32 %v2924_v8, %v2923_v3  ;;  %v2988_v16 = vrot.slane %v2987_v9, 1  ;;  %v2930_v17 = vrot.slane %v2929_v10, 1  ;;  %v2993_v18 = vadd.f32 %v2992_v11, %v2991_v6  ;;  %v4637_v11 = vld [vmem:[%s5504_s5 + $0x168] sm:$0xff]  }
 0x3f2   :  { %4388 = vmatprep.subr.bf16.mxu1 %v4625_v7  ;;  %v3145_v2 = vrot.slane %v5313_v48, %v5105_v35  ;;  %v4636_v35 = vld [vmem:[%s5504_s5 + $0x130] sm:$0xff]  }
 0x3f3   :  { %v2968_v21 = vmul.f32 0.125, %v2925_v15  ;;  %v2989_v22 = vadd.f32 %v2988_v16, %v2987_v9  ;;  %v2931_v23 = vadd.f32 %v2930_v17, %v2929_v10  ;;  %v2994_v24 = vrot.slane %v2993_v18, 1  ;;  %4367 = vmatpush3.bf16.msra.mxu0 %v4610_v12  ;;  %v4635_v10 = vld [vmem:[%s5504_s5 + $0x170] sm:$0xff]   ;;  %v4638_v12 = vld [vmem:[%s5504_s5 + $0x128] sm:$0xff]   ;;  %v4640_v17 = vld [vmem:[%s5504_s5 + $0x120] sm:$0xff]  }
 0x3f4   :  { %4368 = vmatprep.subr.bf16.mxu0 %v4611_v13  ;;  %v1281_v13 = vrot.slane %v5192_v19, %v5117_v42  ;;  %v1285_v15 = vrot.slane %v5192_v19, %v5120_v44 }
 0x3f5   :  { %4389 = vmatpush3.bf16.msra.mxu1 %v4626_v14  ;;  %v3032_v51 = vmul.f32 0.125, %v2989_v22  ;;  %v3040_v30 = vmul.f32 %v2968_v21, %v2968_v21  ;;  %v2969_v34 = vmul.f32 0.125, %v2931_v23  ;;  %v2995_v36 = vadd.f32 %v2994_v24, %v2993_v18  ;;  %v4639_v14 = vld [vmem:[%s5504_s5 + $0x160] sm:$0xff]  }
 0x3f6   :  { %4390 = vmatprep.subr.bf16.mxu1 %v4627_v20  ;;  %v3056_v60 = vsub.f32 %v5227_v38, %v2968_v21  ;;  %v4641_v21 = vld [vmem:[%s5504_s5 + $0x158] sm:$0xff]  }
 0x3f7   :  { %v3048_v37 = vsub.f32 %v3032_v51, %v3040_v30  ;;  %v3041_v25 = vmul.f32 %v2969_v34, %v2969_v34  ;;  %4369 = vmatpush3.bf16.msra.mxu0 %v4612_v26  ;;  %v3033_v28 = vmul.f32 0.125, %v2995_v36  ;;  %v3057_v61 = vsub.f32 %v5235_v58, %v2969_v34  ;;  %v4643_v36 = vld [vmem:[%s5504_s5 + $0x150] sm:$0xff]  }
 0x3f8   :  { %4370 = vmatprep.subr.bf16.mxu0 %v4613_v27 }
 0x3f9   :  { %4391 = vmatpush3.bf16.msra.mxu1 %v4628_v29  ;;  %v3064_v57 = vadd.f32 0.8, %v3048_v37  ;;  %v3049_v41 = vsub.f32 %v3033_v28, %v3041_v25  ;;  %v4642_v29 = vld [vmem:[%s5504_s5 + $0x118] sm:$0xff]  }
 0x3fa   :  { %4392 = vmatprep.subr.bf16.mxu1 %v4629_v52 }
 0x3fb   :  { %4665 = vrsqrt.f32 %v3064_v57  ;;  %4371 = vmatpush3.bf16.msra.mxu0 %v4614_v49  ;;  %v3065_v45 = vadd.f32 0.8, %v3049_v41  ;;  %v4644_v57 = vld [vmem:[%s5504_s5 + $0x110] sm:$0xff]  }
 0x3fc   :  { %4372 = vmatprep.subr.bf16.mxu0 %v4615_v50 }
 0x3fd   :  { %4393 = vmatpush3.bf16.msra.mxu1 %v4630_v39  ;;  %4667 = vrsqrt.f32 %v3065_v45 }
 0x3fe   :  { %4394 = vmatprep.subr.bf16.mxu1 %v4631_v40 }
 0x3ff   :  { %4373 = vmatpush3.bf16.msra.mxu0 %v4616_v43 }
 0x400   :  { %4402 = vmatprep.subr.bf16.mxu0 %v4633_v46 }
 0x401   :  { %4395 = vmatpush3.bf16.msra.mxu1 %v4632_v59  ;;  %v4645_v59 = vld [vmem:[%s5504_s5 + $0x148] sm:$0xff]  }
 0x408   :  { %v4666_v54 = vpop.eup %4665 }
 0x409   :  { %v3080_v55 = vmul.f32 %v4666_v54, %v3056_v60 }
 0x40a   :  { %v4668_v63 = vpop.eup %4667 }
 0x40b   :  { %v3129_v0 = vmul.f32 %v3092_v53, %v3080_v55  ;;  %v3081_v1 = vmul.f32 %v4668_v63, %v3057_v61  ;;  %v4646_v55 = vld [vmem:[%s5504_s5 + $0x108] sm:$0xff]  }
 0x40d   :  { %v3178_v38 = vadd.f32 %v3141_v56, %v3129_v0  ;;  %v3130_v3 = vmul.f32 %v3096_v62, %v3081_v1  ;;  %v4647_v0 = vld [vmem:[%s5504_s5 + $0x140] sm:$0xff]  }
 0x40f   :  { %v3186_v4 = vmul.f32 0.2, %v3178_v38  ;;  %v3179_v5 = vadd.f32 %v3145_v2, %v3130_v3 }
 0x411   :  { %v3187_v6 = vmul.f32 0.2, %v3179_v5  ;;  %v3194_v7 = vmax.f32 %v3178_v38, %v3186_v4  ;;  %v4648_v4 = vld [vmem:[%s5504_s5 + $0x100] sm:$0xff]  }
 0x413   :  { %v3195_v8 = vmax.f32 %v3179_v5, %v3187_v6  ;;  %v3331_v58 = vpack.c.bf16 %v3194_v7, %v3194_v7 }
 0x415   :  { %v3332_v9 = vpack.c.bf16 %v3195_v8, %v3195_v8 }
 0x417   :  { %3761 = vmatprep.mubr.bf16.mxu0 %v3332_v9 }
 0x418   :  { %3762 = vmatmul.mubr.bf16.vlgmr.msra.gmra.mxu0 %v3331_v58 }
 0x419   :  { %4403 = vmatpush3.bf16.msra.mxu0 %v4634_v33 }
 0x41a   :  { %4404 = vmatprep.subr.bf16.mxu0 %v4635_v10 }
 0x41d   :  { %4405 = vmatpush3.bf16.msra.mxu0 %v4636_v35 }
 0x41e   :  { %4406 = vmatprep.subr.bf16.mxu0 %v4637_v11 }
 0x421   :  { %4407 = vmatpush3.bf16.msra.mxu0 %v4638_v12  ;;  %v4649_v12 = vld [vmem:[%s5504_s5 + $0x1f8] sm:$0xff]  }
 0x422   :  { %v2706_v16 = vpop.f32.mrf.mxu0  ;;  %4408 = vmatprep.subr.bf16.mxu0 %v4639_v14  ;;  %4424 = vmatprep.subr.bf16.mxu1 %v4649_v12 }
 0x423   :  { %v2707_v18 = vadd.f32 %v2706_v16, %v1281_v13 }
 0x424   :  { %v2747_v20 = vpop.f32.mrf.mxu1  ;;  %v2708_v22 = vpop.f32.mrf.mxu0 }
 0x425   :  { %v5353_v23 = vadd.f32 %v2747_v20, %v2707_v18  ;;  %v2709_v24 = vadd.f32 %v2708_v22, %v1285_v15  ;;  %4409 = vmatpush3.bf16.msra.mxu0 %v4640_v17  ;;  %v3100_v18 = vrot.slane %v5311_v47, %v5117_v42  ;;  %v3149_v22 = vrot.slane %v5313_v48, %v5117_v42  ;;  %v4650_v42 = vld [vmem:[%s5504_s5 + $0x1b8] sm:$0xff]  }
 0x426   :  { %v2749_v26 = vpop.f32.mrf.mxu1  ;;  %v2710_v27 = vpop.f32.mrf.mxu0  ;;  %4410 = vmatprep.subr.bf16.mxu0 %v4641_v21 }
 0x427   :  { %v2932_v51 = vrot.slane %v5353_v23, 4  ;;  %v2978_v30 = vmul.f32 %v5353_v23, %v5353_v23  ;;  %v5361_v34 = vadd.f32 %v2749_v26, %v2709_v24  ;;  %v3104_v26 = vrot.slane %v5311_v47, %v5120_v44 }
 0x428   :  { %v2751_v52 = vpop.f32.mrf.mxu1  ;;  %v2711_v37 = vpop.f32.mrf.mxu0 }
 0x429   :  { %v2933_v25 = vadd.f32 %v2932_v51, %v5353_v23  ;;  %v2996_v49 = vrot.slane %v2978_v30, 4  ;;  %v2938_v28 = vrot.slane %v5361_v34, 4  ;;  %v2979_v50 = vmul.f32 %v5361_v34, %v5361_v34  ;;  %4411 = vmatpush3.bf16.msra.mxu0 %v4642_v29 }
 0x42a   :  { %v2752_v39 = vpop.f32.mrf.mxu1  ;;  %4412 = vmatprep.subr.bf16.mxu0 %v4643_v36 }
 0x42b   :  { %v2934_v40 = vrot.slane %v2933_v25, 2  ;;  %v2997_v41 = vadd.f32 %v2996_v49, %v2978_v30  ;;  %v2939_v43 = vadd.f32 %v2938_v28, %v5361_v34  ;;  %v3002_v45 = vrot.slane %v2979_v50, 4  ;;  %v4651_v39 = vld [vmem:[%s5504_s5 + $0x1f0] sm:$0xff]  }
 0x42c   :  { %v3153_v30 = vrot.slane %v5313_v48, %v5120_v44  ;;  %v4652_v44 = vld [vmem:[%s5504_s5 + $0x1b0] sm:$0xff]  }
 0x42d   :  { %v2935_v46 = vadd.f32 %v2934_v40, %v2933_v25  ;;  %v2998_v60 = vrot.slane %v2997_v41, 2  ;;  %v2940_v53 = vrot.slane %v2939_v43, 2  ;;  %v3003_v54 = vadd.f32 %v3002_v45, %v2979_v50  ;;  %4413 = vmatpush3.bf16.msra.mxu0 %v4644_v57  ;;  %v4653_v40 = vld [vmem:[%s5504_s5 + $0x1e8] sm:$0xff]  }
 0x42e   :  { %4414 = vmatprep.subr.bf16.mxu0 %v4645_v59  ;;  %v5409_v57 = vsub.s32 4, %v5099_v32  ;;  %v4655_v59 = vld [vmem:[%s5504_s5 + $0x1e0] sm:$0xff]  }
 0x42f   :  { %v2936_v56 = vrot.slane %v2935_v46, 1  ;;  %v2999_v61 = vadd.f32 %v2998_v60, %v2997_v41  ;;  %v2941_v62 = vadd.f32 %v2940_v53, %v2939_v43  ;;  %v3004_v63 = vrot.slane %v3003_v54, 2  ;;  %v4654_v43 = vld [vmem:[%s5504_s5 + $0x1a8] sm:$0xff]   ;;  %v4656_v53 = vld [vmem:[%s5504_s5 + $0x1a0] sm:$0xff]  }
 0x430   :  { %v5415_v41 = vsub.s32 5, %v5099_v32  ;;  %v1289_v45 = vrot.slane %v5192_v19, %v5409_v57 }
 0x431   :  { %v2937_v1 = vadd.f32 %v2936_v56, %v2935_v46  ;;  %v3000_v2 = vrot.slane %v2999_v61, 1  ;;  %v2942_v38 = vrot.slane %v2941_v62, 1  ;;  %v3005_v3 = vadd.f32 %v3004_v63, %v3003_v54  ;;  %4415 = vmatpush3.bf16.msra.mxu0 %v4646_v55  ;;  %v4657_v56 = vld [vmem:[%s5504_s5 + $0x1d8] sm:$0xff]  }
 0x432   :  { %4416 = vmatprep.subr.bf16.mxu0 %v4647_v0  ;;  %v1293_v46 = vrot.slane %v5192_v19, %v5415_v41 }
 0x433   :  { %v2970_v5 = vmul.f32 0.125, %v2937_v1  ;;  %v3001_v6 = vadd.f32 %v3000_v2, %v2999_v61  ;;  %v2943_v7 = vadd.f32 %v2942_v38, %v2941_v62  ;;  %v3006_v8 = vrot.slane %v3005_v3, 1  ;;  %v4658_v2 = vld [vmem:[%s5504_s5 + $0x198] sm:$0xff]  }
 0x435   :  { %v3034_v9 = vmul.f32 0.125, %v3001_v6  ;;  %v3042_v33 = vmul.f32 %v2970_v5, %v2970_v5  ;;  %v2971_v58 = vmul.f32 0.125, %v2943_v7  ;;  %v3007_v10 = vadd.f32 %v3006_v8, %v3005_v3  ;;  %4417 = vmatpush3.bf16.msra.mxu0 %v4648_v4  ;;  %v4659_v6 = vld [vmem:[%s5504_s5 + $0x1d0] sm:$0xff]  }
 0x436   :  { %v3058_v17 = vsub.f32 %v5353_v23, %v2970_v5 }
 0x437   :  { %v3050_v35 = vsub.f32 %v3034_v9, %v3042_v33  ;;  %v3043_v11 = vmul.f32 %v2971_v58, %v2971_v58  ;;  %v3035_v13 = vmul.f32 0.125, %v3007_v10  ;;  %v3059_v24 = vsub.f32 %v5361_v34, %v2971_v58 }
 0x439   :  { %v3066_v14 = vadd.f32 0.8, %v3050_v35  ;;  %v3051_v15 = vsub.f32 %v3035_v13, %v3043_v11  ;;  %v4660_v35 = vld [vmem:[%s5504_s5 + $0x190] sm:$0xff]  }
 0x43b   :  { %4669 = vrsqrt.f32 %v3066_v14  ;;  %v3067_v16 = vadd.f32 0.8, %v3051_v15  ;;  %v4661_v15 = vld [vmem:[%s5504_s5 + $0x1c8] sm:$0xff]  }
 0x43d   :  { %4671 = vrsqrt.f32 %v3067_v16 }
 0x448   :  { %v4670_v20 = vpop.eup %4669 }
 0x449   :  { %v3082_v21 = vmul.f32 %v4670_v20, %v3058_v17 }
 0x44a   :  { %v4672_v27 = vpop.eup %4671 }
 0x44b   :  { %v3131_v29 = vmul.f32 %v3100_v18, %v3082_v21  ;;  %v3083_v51 = vmul.f32 %v4672_v27, %v3059_v24  ;;  %v4662_v21 = vld [vmem:[%s5504_s5 + $0x188] sm:$0xff]  }
 0x44d   :  { %v3180_v23 = vadd.f32 %v3149_v22, %v3131_v29  ;;  %v3132_v52 = vmul.f32 %v3104_v26, %v3083_v51  ;;  %v4663_v29 = vld [vmem:[%s5504_s5 + $0x1c0] sm:$0xff]  }
 0x44f   :  { %v3188_v36 = vmul.f32 0.2, %v3180_v23  ;;  %v3181_v37 = vadd.f32 %v3153_v30, %v3132_v52 }
 0x451   :  { %v3189_v25 = vmul.f32 0.2, %v3181_v37  ;;  %v3196_v49 = vmax.f32 %v3180_v23, %v3188_v36  ;;  %v4664_v36 = vld [vmem:[%s5504_s5 + $0x180] sm:$0xff]   ;;  %s4804_s5 = smov 32  }
 0x453   :  { %v3197_v28 = vmax.f32 %v3181_v37, %v3189_v25  ;;  %v3333_v34 = vpack.c.bf16 %v3196_v49, %v3196_v49 }
 0x455   :  { %v3334_v50 = vpack.c.bf16 %v3197_v28, %v3197_v28 }
 0x457   :  { %3801 = vmatprep.mubr.bf16.mxu1 %v3334_v50 }
 0x458   :  { %3802 = vmatmul.mubr.bf16.vlgmr.msra.gmra.mxu1 %v3333_v34 }
 0x459   :  { %4425 = vmatpush3.bf16.msra.mxu1 %v4650_v42 }
 0x45a   :  { %4426 = vmatprep.subr.bf16.mxu1 %v4651_v39 }
 0x45d   :  { %4427 = vmatpush3.bf16.msra.mxu1 %v4652_v44 }
 0x45e   :  { %4428 = vmatprep.subr.bf16.mxu1 %v4653_v40 }
 0x461   :  { %4429 = vmatpush3.bf16.msra.mxu1 %v4654_v43 }
 0x462   :  { %v2788_v60 = vpop.f32.mrf.mxu0  ;;  %4430 = vmatprep.subr.bf16.mxu1 %v4655_v59 }
 0x463   :  { %v2789_v54 = vadd.f32 %v2788_v60, %v1289_v45  ;;  %v3108_v60 = vrot.slane %v5311_v47, %v5409_v57 }
 0x464   :  { %v2829_v55 = vpop.f32.mrf.mxu1  ;;  %v2790_v61 = vpop.f32.mrf.mxu0 }
 0x465   :  { %v5433_v62 = vadd.f32 %v2829_v55, %v2789_v54  ;;  %v2791_v63 = vadd.f32 %v2790_v61, %v1293_v46  ;;  %4431 = vmatpush3.bf16.msra.mxu1 %v4656_v53  ;;  %v3157_v55 = vrot.slane %v5313_v48, %v5409_v57 }
 0x466   :  { %v2831_v0 = vpop.f32.mrf.mxu1  ;;  %v2792_v1 = vpop.f32.mrf.mxu0  ;;  %4432 = vmatprep.subr.bf16.mxu1 %v4657_v56 }
 0x467   :  { %v2944_v38 = vrot.slane %v5433_v62, 4  ;;  %v2980_v3 = vmul.f32 %v5433_v62, %v5433_v62  ;;  %v5441_v4 = vadd.f32 %v2831_v0, %v2791_v63  ;;  %v3112_v63 = vrot.slane %v5311_v47, %v5415_v41 }
 0x468   :  { %v2833_v5 = vpop.f32.mrf.mxu1  ;;  %v2793_v7 = vpop.f32.mrf.mxu0 }
 0x469   :  { %v2945_v8 = vadd.f32 %v2944_v38, %v5433_v62  ;;  %v3008_v9 = vrot.slane %v2980_v3, 4  ;;  %v2950_v33 = vrot.slane %v5441_v4, 4  ;;  %v2981_v58 = vmul.f32 %v5441_v4, %v5441_v4  ;;  %4433 = vmatpush3.bf16.msra.mxu1 %v4658_v2 }
 0x46a   :  { %v2834_v10 = vpop.f32.mrf.mxu1  ;;  %4434 = vmatprep.subr.bf16.mxu1 %v4659_v6  ;;  %v3161_v38 = vrot.slane %v5313_v48, %v5415_v41 }
 0x46b   :  { %v2946_v11 = vrot.slane %v2945_v8, 2  ;;  %v3009_v12 = vadd.f32 %v3008_v9, %v2980_v3  ;;  %v2951_v13 = vadd.f32 %v2950_v33, %v5441_v4  ;;  %v3014_v14 = vrot.slane %v2981_v58, 4 }
 0x46d   :  { %v2947_v16 = vadd.f32 %v2946_v11, %v2945_v8  ;;  %v3010_v17 = vrot.slane %v3009_v12, 2  ;;  %v2952_v18 = vrot.slane %v2951_v13, 2  ;;  %v3015_v20 = vadd.f32 %v3014_v14, %v2981_v58  ;;  %4435 = vmatpush3.bf16.msra.mxu1 %v4660_v35 }
 0x46e   :  { %4436 = vmatprep.subr.bf16.mxu1 %v4661_v15  ;;  %v5480_v58 = vsub.s32 7, %v5099_v32 }
 0x46f   :  { %v2948_v22 = vrot.slane %v2947_v16, 1  ;;  %v3011_v24 = vadd.f32 %v3010_v17, %v3009_v12  ;;  %v2953_v26 = vadd.f32 %v2952_v18, %v2951_v13  ;;  %v3016_v27 = vrot.slane %v3015_v20, 2 }
 0x470   :  { %v1301_v10 = vrot.slane %v5192_v19, %v5480_v58 }
 0x471   :  { %v2949_v51 = vadd.f32 %v2948_v22, %v2947_v16  ;;  %v3012_v30 = vrot.slane %v3011_v24, 1  ;;  %v2954_v23 = vrot.slane %v2953_v26, 1  ;;  %v3017_v52 = vadd.f32 %v3016_v27, %v3015_v20  ;;  %4437 = vmatpush3.bf16.msra.mxu1 %v4662_v21 }
 0x472   :  { %4438 = vmatprep.subr.bf16.mxu1 %v4663_v29 }
 0x473   :  { %v2972_v37 = vmul.f32 0.125, %v2949_v51  ;;  %v3013_v25 = vadd.f32 %v3012_v30, %v3011_v24  ;;  %v2955_v49 = vadd.f32 %v2954_v23, %v2953_v26  ;;  %v3018_v28 = vrot.slane %v3017_v52, 1 }
 0x475   :  { %v3036_v50 = vmul.f32 0.125, %v3013_v25  ;;  %v3044_v42 = vmul.f32 %v2972_v37, %v2972_v37  ;;  %v2973_v34 = vmul.f32 0.125, %v2955_v49  ;;  %v3019_v39 = vadd.f32 %v3018_v28, %v3017_v52  ;;  %4439 = vmatpush3.bf16.msra.mxu1 %v4664_v36 }
 0x476   :  { %v3060_v53 = vsub.f32 %v5433_v62, %v2972_v37 }
 0x477   :  { %v3052_v44 = vsub.f32 %v3036_v50, %v3044_v42  ;;  %v3045_v40 = vmul.f32 %v2973_v34, %v2973_v34  ;;  %v3037_v43 = vmul.f32 0.125, %v3019_v39  ;;  %v3061_v61 = vsub.f32 %v5441_v4, %v2973_v34 }
 0x478   :  { %v5477_v4 = vsub.s32 6, %v5099_v32 }
 0x479   :  { %v3068_v45 = vadd.f32 0.8, %v3052_v44  ;;  %v3053_v59 = vsub.f32 %v3037_v43, %v3045_v40 }
 0x47a   :  { %v1297_v41 = vrot.slane %v5192_v19, %v5477_v4 }
 0x47b   :  { %4673 = vrsqrt.f32 %v3068_v45  ;;  %v3069_v46 = vadd.f32 0.8, %v3053_v59 }
 0x47d   :  { %4675 = vrsqrt.f32 %v3069_v46 }
 0x488   :  { %v4674_v54 = vpop.eup %4673 }
 0x489   :  { %v3084_v56 = vmul.f32 %v4674_v54, %v3060_v53 }
 0x48a   :  { %v4676_v0 = vpop.eup %4675 }
 0x48b   :  { %v3133_v1 = vmul.f32 %v3108_v60, %v3084_v56  ;;  %v3085_v2 = vmul.f32 %v4676_v0, %v3061_v61 }
 0x48d   :  { %v3182_v3 = vadd.f32 %v3157_v55, %v3133_v1  ;;  %v3134_v5 = vmul.f32 %v3112_v63, %v3085_v2 }
 0x48f   :  { %v3190_v6 = vmul.f32 0.2, %v3182_v3  ;;  %v3183_v62 = vadd.f32 %v3161_v38, %v3134_v5 }
 0x491   :  { %v3191_v7 = vmul.f32 0.2, %v3183_v62  ;;  %v3198_v8 = vmax.f32 %v3182_v3, %v3190_v6  ;;  %v3116_v3 = vrot.slane %v5311_v47, %v5477_v4 }
 0x493   :  { %v3199_v9 = vmax.f32 %v3183_v62, %v3191_v7  ;;  %v3335_v33 = vpack.c.bf16 %v3198_v8, %v3198_v8  ;;  %v3165_v62 = vrot.slane %v5313_v48, %v5477_v4 }
 0x495   :  { %v3336_v57 = vpack.c.bf16 %v3199_v9, %v3199_v9  ;;  %v3120_v9 = vrot.slane %v5311_v47, %v5480_v58 }
 0x497   :  { %3841 = vmatprep.mubr.bf16.mxu0 %v3336_v57 }
 0x498   :  { %3842 = vmatmul.mubr.bf16.vlgmr.msra.gmra.mxu0 %v3335_v33 }
 0x4a2   :  { %v2870_v35 = vpop.f32.mrf.mxu0 }
 0x4a3   :  { %v2871_v11 = vadd.f32 %v2870_v35, %v1297_v41 }
 0x4a4   :  { %v2911_v12 = vpop.f32.mrf.mxu1  ;;  %v2872_v13 = vpop.f32.mrf.mxu0 }
 0x4a5   :  { %v2912_v14 = vadd.f32 %v2911_v12, %v2871_v11  ;;  %v2873_v15 = vadd.f32 %v2872_v13, %v1301_v10  ;;  %v3169_v10 = vrot.slane %v5313_v48, %v5480_v58 }
 0x4a6   :  { %v2913_v16 = vpop.f32.mrf.mxu1  ;;  %v2874_v17 = vpop.f32.mrf.mxu0 }
 0x4a7   :  { %v2956_v18 = vrot.slane %v2912_v14, 4  ;;  %v2982_v20 = vmul.f32 %v2912_v14, %v2912_v14  ;;  %v2914_v21 = vadd.f32 %v2913_v16, %v2873_v15 }
 0x4a8   :  { %v2915_v22 = vpop.f32.mrf.mxu1  ;;  %v2875_v32 = vpop.f32.mrf.mxu0 }
 0x4a9   :  { %v2957_v24 = vadd.f32 %v2956_v18, %v2912_v14  ;;  %v3020_v26 = vrot.slane %v2982_v20, 4  ;;  %v2962_v27 = vrot.slane %v2914_v21, 4  ;;  %v2983_v29 = vmul.f32 %v2914_v21, %v2914_v21  ;;  %v4289_v32 = vld [vmem:[#allocation9 + $0x2b] ss:$0 sm:$0xff] }
 0x4aa   :  { %v2916_v51 = vpop.f32.mrf.mxu1 }
 0x4ab   :  { %v2958_v30 = vrot.slane %v2957_v24, 2  ;;  %v3021_v19 = vadd.f32 %v3020_v26, %v2982_v20  ;;  %v2963_v23 = vadd.f32 %v2962_v27, %v2914_v21  ;;  %v3026_v52 = vrot.slane %v2983_v29, 4 }
 0x4ad   :  { %v2959_v36 = vadd.f32 %v2958_v30, %v2957_v24  ;;  %v3022_v37 = vrot.slane %v3021_v19, 2  ;;  %v2964_v25 = vrot.slane %v2963_v23, 2  ;;  %v3027_v49 = vadd.f32 %v3026_v52, %v2983_v29 }
 0x4af   :  { %v2960_v28 = vrot.slane %v2959_v36, 1  ;;  %v3023_v50 = vadd.f32 %v3022_v37, %v3021_v19  ;;  %v2965_v42 = vadd.f32 %v2964_v25, %v2963_v23  ;;  %v3028_v34 = vrot.slane %v3027_v49, 2 }
 0x4b1   :  { %v2961_v39 = vadd.f32 %v2960_v28, %v2959_v36  ;;  %v3024_v44 = vrot.slane %v3023_v50, 1  ;;  %v2966_v40 = vrot.slane %v2965_v42, 1  ;;  %v3029_v43 = vadd.f32 %v3028_v34, %v3027_v49 }
 0x4b3   :  { %v2974_v45 = vmul.f32 0.125, %v2961_v39  ;;  %v3025_v59 = vadd.f32 %v3024_v44, %v3023_v50  ;;  %v2967_v46 = vadd.f32 %v2966_v40, %v2965_v42  ;;  %v3030_v60 = vrot.slane %v3029_v43, 1 }
 0x4b5   :  { %v3038_v53 = vmul.f32 0.125, %v3025_v59  ;;  %v3046_v54 = vmul.f32 %v2974_v45, %v2974_v45  ;;  %v2975_v55 = vmul.f32 0.125, %v2967_v46  ;;  %v3031_v56 = vadd.f32 %v3030_v60, %v3029_v43 }
 0x4b6   :  { %v3062_v5 = vsub.f32 %v2912_v14, %v2974_v45  ;;  %v3898_v59 = vand.u32 127, %v164_v31 }
 0x4b7   :  { %v3054_v61 = vsub.f32 %v3038_v53, %v3046_v54  ;;  %v3047_v63 = vmul.f32 %v2975_v55, %v2975_v55  ;;  %v3039_v0 = vmul.f32 0.125, %v3031_v56  ;;  %v3063_v8 = vsub.f32 %v2914_v21, %v2975_v55 }
 0x4b8   :  { %v3903_v46 = vand.u32 1, %v3898_v59 }
 0x4b9   :  { %v3070_v1 = vadd.f32 0.8, %v3054_v61  ;;  %v3055_v2 = vsub.f32 %v3039_v0, %v3047_v63 }
 0x4ba   :  { %vm3911_vm3 = vcmp.eq.s32.totalorder %v3903_v46, 0 }
 0x4bb   :  { %4677 = vrsqrt.f32 %v3070_v1  ;;  %v3071_v38 = vadd.f32 0.8, %v3055_v2 }
 0x4bd   :  { %4679 = vrsqrt.f32 %v3071_v38 }
 0x4c8   :  { %v4678_v6 = vpop.eup %4677 }
 0x4c9   :  { %v3086_v7 = vmul.f32 %v4678_v6, %v3062_v5 }
 0x4ca   :  { %v4680_v57 = vpop.eup %4679 }
 0x4cb   :  { %v3135_v33 = vmul.f32 %v3116_v3, %v3086_v7  ;;  %v3087_v41 = vmul.f32 %v4680_v57, %v3063_v8 }
 0x4cd   :  { %v3184_v35 = vadd.f32 %v3165_v62, %v3135_v33  ;;  %v3136_v11 = vmul.f32 %v3120_v9, %v3087_v41 }
 0x4cf   :  { %v3192_v12 = vmul.f32 0.2, %v3184_v35  ;;  %v3185_v13 = vadd.f32 %v3169_v10, %v3136_v11 }
 0x4d1   :  { %v3193_v14 = vmul.f32 0.2, %v3185_v13  ;;  %v3200_v15 = vmax.f32 %v3184_v35, %v3192_v12 }
 0x4d3   :  { %v3201_v16 = vmax.f32 %v3185_v13, %v3193_v14  ;;  %v3337_v4 = vpack.c.bf16 %v3200_v15, %v3200_v15 }
 0x4d5   :  { %v3338_v17 = vpack.c.bf16 %v3201_v16, %v3201_v16 }
 0x4d7   :  { %3881 = vmatprep.mubr.bf16.mxu1 %v3338_v17 }
 0x4d8   :  { %v4374_v18 = vpop.f32.mrf.mxu0  ;;  %3882 = vmatmul.mubr.bf16.vlgmr.msra.gmra.mxu1 %v3337_v4 }
 0x4da   :  { %v4375_v20 = vpop.f32.mrf.mxu0 }
 0x4db   :  { %v4376_v47 = vadd.f32 %v4375_v20, %v4374_v18 }
 0x4dc   :  { %v4377_v21 = vpop.f32.mrf.mxu0 }
 0x4dd   :  { %v3764_v48 = vadd.f32 %v4376_v47, %v4289_v32 }
 0x4de   :  { %v4378_v22 = vpop.f32.mrf.mxu0 }
 0x518   :  { %v4396_v24 = vpop.f32.mrf.mxu1 }
 0x51a   :  { %v4397_v26 = vpop.f32.mrf.mxu1 }
 0x51b   :  { %v4398_v58 = vadd.f32 %v4397_v26, %v4396_v24 }
 0x51c   :  { %v4399_v27 = vpop.f32.mrf.mxu1 }
 0x51d   :  { %v3804_v29 = vadd.f32 %v4398_v58, %v3764_v48 }
 0x51e   :  { %v4400_v51 = vpop.f32.mrf.mxu1 }
 0x558   :  { %v4418_v30 = vpop.f32.mrf.mxu0 }
 0x55a   :  { %v4419_v19 = vpop.f32.mrf.mxu0 }
 0x55b   :  { %v4420_v23 = vadd.f32 %v4419_v19, %v4418_v30 }
 0x55c   :  { %v4421_v52 = vpop.f32.mrf.mxu0 }
 0x55d   :  { %v3844_v36 = vadd.f32 %v4420_v23, %v3804_v29 }
 0x55e   :  { %v4422_v37 = vpop.f32.mrf.mxu0 }
 0x598   :  { %v4440_v25 = vpop.f32.mrf.mxu1 }
 0x59a   :  { %v4441_v49 = vpop.f32.mrf.mxu1 }
 0x59b   :  { %v4442_v28 = vadd.f32 %v4441_v49, %v4440_v25 }
 0x59c   :  { %v4443_v50 = vpop.f32.mrf.mxu1 }
 0x59d   :  { %v3884_v42 = vadd.f32 %v4442_v28, %v3844_v36 }
 0x59e   :  { %v4444_v34 = vpop.f32.mrf.mxu1 }
 0x59f   :  { %4681 = vtanh.f32 %v3884_v42 }
 0x5ac   :  { %v4682_v39 = vpop.eup %4681 }
 0x5ad   :  { %3891 = vrot.lane.b32.xlu0 %v4682_v39, %s4804_s5 }
 0x61f   :  { %v3892_v44 = vpop.permute.xlu0 %3891 }
 0x620   :  { %v3893_v40 = vsel %vm3890_vm2, %v3892_v44, %v4682_v39 }
 0x621   :  { %3894 = vrot.lane.b32.xlu0 %v3893_v40, %s4804_s5 }
 0x693   :  { %v3895_v43 = vpop.permute.xlu0 %3894 }
 0x694   :  { %v3896_v45 = vsel %vm3890_vm2, %v3895_v43, %v4682_v39 }
 0x695   :  { %3913 = vrot.lane.b32.xlu1 %v3896_v45, %s4805_s2 }
 0x699   :  { %3916 = vrot.lane.b32.xlu1 %v3896_v45, %s4806_s29 }
 0x707   :  { %v3914_v60 = vpop.permute.xlu1 %3913 }
 0x70b   :  { %v3917_v53 = vpop.permute.xlu1 %3916 }
 0x70c   :  { %v3919_v54 = vsel %vm3911_vm3, %v3914_v60, %v3917_v53 }
 0x70d   :  { %v3920_v55 = vsub.f32 %v3919_v54, %v4682_v39 }
 0x70f   :  { %v3921_v56 = vmul.f32 1.442695, %v3920_v55 }
 0x711   :  { %4683 = vpow2.f32 %v3921_v56 }
 0x71e   :  { %v4684_v61 = vpop.eup %4683 }
 0x71f   :  { %v3923_v63 = vadd.f32 1.0, %v4684_v61 }
 0x721   :  { %4685 = vrcp.f32 %v3923_v63 }
 0x72e   :  { %v4686_v0 = vpop.eup %4685 }
 0x72f   :  { %3926 = vst.msk [vmem:[#allocation10] sm:$0xff] %vm99_vm1, %v4686_v0 }
 0x730   :  { %4778 = shalt.err (!%p4775_p10)
}
 0x731   :  { %3936 = dma.vmem_to_hbm [thread:$0]  %s3934_s8, 128, %s5506_s7, [#allocation6]  }
 0x732   :  { %4793 = dma.done.wait [#allocation6], 128  }
 0x733   :  { %4794 = vsyncadd [#allocation6], 4294967168 }
 0x734   :  { %3940 = vsyncpa [#allocation5], 1 }
 0x735   :  { %3941 = vsyncpa [#allocation8], 1 }
 0x736   :  { %3942 = vsyncpa [#allocation6], 1 }
 0x737   :  { %3943 = vsyncmov [#allocation3] }
 0x73a   :  { %s3944_s12 = vpop.sfrf %3943 }
 0x73b   :  { %p4354_p11 = scmp.ne.s32.totalorder %s3944_s12, 0 }
 0x73d   :  { %3948 = shalt.err (%p4354_p11)  }

</bundles_post_ra>
